<compile_context>
chip_gen: v7x
topology: tpu7x:2x2x1
jax: 0.10.0
libtpu: 0.0.40
codegen_flags: <defaults>
</compile_context>

<pallas_src>
import jax
import jax.numpy as jnp
from jax.experimental import pallas as pl
from jax.experimental.pallas import tpu as pltpu


def _round_up(x, m):
    return ((x + m - 1) // m) * m


def _sublane_multiple(dtype):
    itemsize = jnp.dtype(dtype).itemsize
    return {4: 8, 2: 16, 1: 32}.get(itemsize, 8)


def _vmem_capacity_bytes():
    """Physical VMEM per TensorCore; falls back to 128 MiB (v5e/v6e)."""
    try:
        info = pltpu.get_tpu_info()
        for attr in ("vmem_capacity_bytes", "vmem_bytes", "vmem_size_bytes"):
            v = getattr(info, attr, None)
            if v:
                return int(v)
    except Exception:
        pass
    return 128 << 20


def _make_mlp_kernel(n_layers, true_out_dims, negative_slope, eps, mxu_dtype):
    """Fused kernel: [Linear -> LayerNorm -> LeakyReLU] x n_layers."""

    def kernel(x_ref, *refs):
        o_ref = refs[-1]
        p_refs = refs[:-1]          # 2 refs per layer: W, fused [b; gamma; beta]
        h = x_ref[...]
        for li in range(n_layers):
            w_ref = p_refs[2 * li]
            bgb_ref = p_refs[2 * li + 1]
            inv_f = 1.0 / float(true_out_dims[li])

            # Linear: bf16 operands on the MXU, f32 accumulation.
            a = h if h.dtype == mxu_dtype else h.astype(mxu_dtype)
            z = jnp.dot(a, w_ref[...], preferred_element_type=jnp.float32)
            z = z + bgb_ref[0:1, :]                       # bias (f32)

            # LayerNorm over the TRUE feature count. Padded lanes are exact zeros
            # (zero weight cols + zero bias), so they contribute nothing to the
            # sums. One reduction pass with a clamped variance (f32 cancellation).
            s = jnp.sum(z, axis=-1, keepdims=True)
            ss = jnp.sum(z * z, axis=-1, keepdims=True)
            mean = s * inv_f
            var = jnp.maximum(ss * inv_f - mean * mean, 0.0)
            zn = (z - mean) * jax.lax.rsqrt(var + eps)
            zn = zn * bgb_ref[1:2, :] + bgb_ref[2:3, :]   # gamma, beta (f32)

            # LeakyReLU. Padded lanes: gamma=beta=0 => zn=0 => stays 0.
            h = jnp.where(zn >= 0, zn, negative_slope * zn)   # kept f32 (v5e VPU)

        o_ref[...] = h.astype(o_ref.dtype)

    return kernel


def prepare_mlp_params(params, in_features, *, mxu_dtype=jnp.bfloat16):
    """One-time parameter prep (hoisted out of the forward hot path).

    params: list of (W(fin,fout), b(fout), gamma(fout), beta(fout)) per layer,
            i.e. y = x @ W + b (PyTorch Linear with weight of shape (fout, fin)).
    Pads feature dims to multiples of 128, casts weights to the MXU dtype, and
    fuses (b, gamma, beta) into one (3, fout_pad) f32 block per layer.
    """
    out_dims = [w.shape[1] for (w, _, _, _) in params]
    in_dims = [in_features] + out_dims[:-1]
    in_pads = [_round_up(d, 128) for d in in_dims]
    out_pads = [_round_up(d, 128) for d in out_dims]

    weights, bgbs = [], []
    for li, (w, b, g, be) in enumerate(params):
        fi, fo = w.shape
        assert fi == in_dims[li]
        fi_p, fo_p = in_pads[li], out_pads[li]
        w_p = jnp.pad(w, ((0, fi_p - fi), (0, fo_p - fo))).astype(mxu_dtype)
        bgb = jnp.stack(
            [jnp.pad(v, (0, fo_p - fo)).astype(jnp.float32) for v in (b, g, be)],
            axis=0)                                       # (3, fo_p) f32
        weights.append(w_p)
        bgbs.append(bgb)

    return dict(in_features=in_features, n_layers=len(params), out_dims=out_dims,
                in_pads=in_pads, out_pads=out_pads, weights=weights, bgbs=bgbs,
                mxu_dtype=mxu_dtype)


def mlp_forward(x, prep, *, negative_slope=0.2, eps=1e-5, tile_b=None):
    """Fused MLP forward. x: (B, in_features); prep: prepare_mlp_params() output."""
    B, f_in = x.shape
    assert f_in == prep["in_features"]
    n_layers = prep["n_layers"]
    in_pads, out_pads, out_dims = prep["in_pads"], prep["out_pads"], prep["out_dims"]
    mxu_dtype = prep["mxu_dtype"]

    # ---- Generation-aware tiling / VMEM budget. ----
    sublane = _sublane_multiple(x.dtype)
    vmem_cap = _vmem_capacity_bytes()
    vmem_ceiling = int(vmem_cap * 0.8)          # headroom for compiler scratch/spill
    small_vmem = vmem_cap <= (96 << 20)         # v7x-like: 64 MiB/TC, 2 TCs

    if tile_b is None:
        if small_vmem:
            # Smaller tile and >=2 grid steps (when B permits) so the "parallel"
            # batch axis can shard across both v7x TensorCores.
            tile_b = min(256, _round_up(-(-B // 2), sublane))
        else:
            tile_b = min(512, _round_up(B, sublane))
    tile_b = max(sublane, _round_up(tile_b, sublane))
    b_pad = _round_up(B, tile_b)
    grid = (b_pad // tile_b,)

    # Only the activation pad stays in the hot path (params were prepped once).
    x_p = jnp.pad(x, ((0, b_pad - B), (0, in_pads[0] - f_in)))

    flat_params = []
    for w_p, bgb in zip(prep["weights"], prep["bgbs"]):
        flat_params += [w_p, bgb]

    kernel = _make_mlp_kernel(n_layers, out_dims, negative_slope, eps, mxu_dtype)
    out_specs = pl.BlockSpec((tile_b, out_pads[-1]), lambda i: (i, 0))

    def _in_specs(single_buffer_params):
        specs = [pl.BlockSpec((tile_b, in_pads[0]), lambda i: (i, 0))]
        for li in range(n_layers):
            fi_p, fo_p = in_pads[li], out_pads[li]
            kw = {"pipeline_mode": pl.Buffered(1)} if single_buffer_params else {}
            # Constant index maps -> blocks stay resident in VMEM across grid steps.
            specs.append(pl.BlockSpec((fi_p, fo_p), lambda i: (0, 0), **kw))
            specs.append(pl.BlockSpec((3, fo_p), lambda i: (0, 0), **kw))
        return specs

    # ---- Advisory cost / VMEM hints. ----
    w_item = jnp.dtype(mxu_dtype).itemsize
    x_item = jnp.dtype(x.dtype).itemsize
    param_vmem = sum(in_pads[i] * out_pads[i] * w_item + 8 * out_pads[i] * 4
                     for i in range(n_layers))
    act_vmem = tile_b * max(max(in_pads), max(out_pads)) * 4
    io_vmem = 2 * tile_b * (in_pads[0] + out_pads[-1]) * x_item
    flops = sum(2 * b_pad * in_pads[i] * out_pads[i] + 8 * b_pad * out_pads[i]
                for i in range(n_layers))
    hbm_bytes = (sum(int(a.size) * a.dtype.itemsize for a in flat_params)
                 + int(x_p.size) * x_item + b_pad * out_pads[-1] * x_item)
    cost = pl.CostEstimate(flops=flops, transcendentals=b_pad * n_layers,
                           bytes_accessed=hbm_bytes)

    def _run(single_buffer_params):
        buf_mult = 1 if single_buffer_params else 2
        vmem_need = buf_mult * param_vmem + io_vmem + 8 * act_vmem
        vmem_limit = int(min(vmem_ceiling, max(4 << 20, vmem_need)))
        res = pl.pallas_call(
            kernel,
            out_shape=jax.ShapeDtypeStruct((b_pad, out_pads[-1]), x.dtype),
            grid_spec=pltpu.PrefetchScalarGridSpec(
                num_scalar_prefetch=0,
                grid=grid,
                in_specs=_in_specs(single_buffer_params),
                out_specs=out_specs,
            ),
            compiler_params=pltpu.CompilerParams(
                dimension_semantics=("parallel",),
                vmem_limit_bytes=vmem_limit,
            ),
            cost_estimate=cost,
        )(x_p, *flat_params)
        return jax.block_until_ready(res)

    try:
        out = _run(single_buffer_params=True)
    except Exception:
        # pipeline_mode=pl.Buffered(1) not supported on this jax build; fall back
        # to the default (double-buffered) specs for the constant parameter blocks.
        out = _run(single_buffer_params=False)

    return out[:B, :out_dims[-1]]


def init_mlp_params(key, in_features, hidden_features, out_features,
                    hidden_layers, dtype=jnp.float32):
    """Deterministic synthetic init matching the PyTorch module's shapes/defaults."""
    dims = ([(in_features, hidden_features)]
            + [(hidden_features, hidden_features)] * hidden_layers
            + [(hidden_features, out_features)])
    params = []
    for (fin, fout) in dims:
        key, kw, kb = jax.random.split(key, 3)
        bound = 1.0 / jnp.sqrt(fin)
        w = jax.random.uniform(kw, (fin, fout), dtype, -bound, bound)
        b = jax.random.uniform(kb, (fout,), dtype, -bound, bound)
        gamma = jnp.ones((fout,), dtype)   # nn.LayerNorm default weight
        beta = jnp.zeros((fout,), dtype)   # nn.LayerNorm default bias
        params.append((w, b, gamma, beta))
    return params


def mlp_reference(x, params, *, negative_slope=0.2, eps=1e-5, mxu_dtype=None):
    """Pure-JAX reference (PyTorch semantics). If mxu_dtype is given, the matmul
    operands are rounded to it first (emulating the kernel's bf16 MXU feed)."""
    h = x.astype(jnp.float32)
    for (w, b, g, be) in params:
        a = h
        wf = w.astype(jnp.float32)
        if mxu_dtype is not None:
            a = a.astype(mxu_dtype).astype(jnp.float32)
            wf = w.astype(mxu_dtype).astype(jnp.float32)
        z = a @ wf + b.astype(jnp.float32)
        mean = jnp.mean(z, axis=-1, keepdims=True)
        var = jnp.mean((z - mean) ** 2, axis=-1, keepdims=True)
        zn = (z - mean) * jax.lax.rsqrt(var + eps) * g.astype(jnp.float32) \
            + be.astype(jnp.float32)
        h = jnp.where(zn >= 0, zn, negative_slope * zn)
    return h.astype(x.dtype)


if __name__ == "__main__":
    # MlpConfig(in_features=16, hidden_features=32, out_features=8,
    #           hidden_layers=2, negative_slope=0.2)
    in_features, hidden_features, out_features, hidden_layers = 16, 32, 8, 2
    batch = 8

    key = jax.random.PRNGKey(0)
    kx, kp = jax.random.split(key)
    x = jax.random.normal(kx, (batch, in_features), jnp.float32)
    params = init_mlp_params(kp, in_features, hidden_features, out_features,
                             hidden_layers)

    # One-time parameter prep (padding / bf16 cast / bias-gamma-beta fusion).
    prep = prepare_mlp_params(params, in_features)

    out = mlp_forward(x, prep, negative_slope=0.2)
    out = jax.block_until_ready(out)
    assert out.shape == (batch, out_features)

    # Tight check against a reference that emulates the bf16 MXU operands.
    ref_bf16 = mlp_reference(x, params, negative_slope=0.2, mxu_dtype=jnp.bfloat16)
    assert jnp.allclose(out, ref_bf16, rtol=1e-2, atol=1e-2), float(
        jnp.max(jnp.abs(out - ref_bf16)))

    # Looser sanity check against the exact f32 reference (bf16 rounding only).
    ref_f32 = mlp_reference(x, params, negative_slope=0.2)
    assert jnp.allclose(out, ref_f32, rtol=5e-2, atol=5e-2), float(
        jnp.max(jnp.abs(out - ref_f32)))

    print("KERNEL_OK")
</pallas_src>

<mosaic_0001>
module attributes {stable_mosaic.version = 11 : i64} {
  func.func @kernel(%arg0: i32, %arg1: memref<8x128xf32, #tpu.memory_space<vmem>>, %arg2: memref<128x128xbf16, #tpu.memory_space<vmem>>, %arg3: memref<3x128xf32, #tpu.memory_space<vmem>>, %arg4: memref<128x128xbf16, #tpu.memory_space<vmem>>, %arg5: memref<3x128xf32, #tpu.memory_space<vmem>>, %arg6: memref<128x128xbf16, #tpu.memory_space<vmem>>, %arg7: memref<3x128xf32, #tpu.memory_space<vmem>>, %arg8: memref<128x128xbf16, #tpu.memory_space<vmem>>, %arg9: memref<3x128xf32, #tpu.memory_space<vmem>>, %arg10: memref<8x128xf32, #tpu.memory_space<vmem>>) attributes {dimension_semantics = [#tpu.dimension_semantics<parallel>], iteration_bounds = array<i64: 1>, scalar_prefetch = 0 : i64, scratch_operands = 0 : i64, tpu.core_type = #tpu.core_type<tc>, window_params = [{transform_indices = @transform_0, window_bounds = array<i64: 8, 128>}, {pipeline_mode = #tpu.pipeline_mode<synchronous>, transform_indices = @transform_1, window_bounds = array<i64: 128, 128>}, {pipeline_mode = #tpu.pipeline_mode<synchronous>, transform_indices = @transform_2, window_bounds = array<i64: 3, 128>}, {pipeline_mode = #tpu.pipeline_mode<synchronous>, transform_indices = @transform_3, window_bounds = array<i64: 128, 128>}, {pipeline_mode = #tpu.pipeline_mode<synchronous>, transform_indices = @transform_4, window_bounds = array<i64: 3, 128>}, {pipeline_mode = #tpu.pipeline_mode<synchronous>, transform_indices = @transform_5, window_bounds = array<i64: 128, 128>}, {pipeline_mode = #tpu.pipeline_mode<synchronous>, transform_indices = @transform_6, window_bounds = array<i64: 3, 128>}, {pipeline_mode = #tpu.pipeline_mode<synchronous>, transform_indices = @transform_7, window_bounds = array<i64: 128, 128>}, {pipeline_mode = #tpu.pipeline_mode<synchronous>, transform_indices = @transform_8, window_bounds = array<i64: 3, 128>}, {transform_indices = @transform_9, window_bounds = array<i64: 8, 128>}]} {
    %c0 = arith.constant 0 : index
    %c0_0 = arith.constant 0 : index
    %0 = vector.load %arg1[%c0, %c0_0] : memref<8x128xf32, #tpu.memory_space<vmem>>, vector<8x128xf32>
    %1 = arith.truncf %0 : vector<8x128xf32> to vector<8x128xbf16>
    %c0_1 = arith.constant 0 : index
    %c0_2 = arith.constant 0 : index
    %2 = vector.load %arg2[%c0_1, %c0_2] : memref<128x128xbf16, #tpu.memory_space<vmem>>, vector<128x128xbf16>
    %cst = arith.constant dense<0.000000e+00> : vector<8x128xf32>
    %3 = tpu.matmul %1, %2, %cst {dimension_numbers = #tpu.dot_dimension_numbers<[1], [0], [0], [1], [0, 0, 1, 1], [], []>} : vector<8x128xbf16>, vector<128x128xbf16>, vector<8x128xf32> -> vector<8x128xf32>
    %c0_3 = arith.constant 0 : index
    %c0_4 = arith.constant 0 : index
    %4 = vector.load %arg3[%c0_3, %c0_4] : memref<3x128xf32, #tpu.memory_space<vmem>>, vector<1x128xf32>
    %5 = vector.broadcast %4 : vector<1x128xf32> to vector<8x128xf32>
    %6 = arith.addf %3, %5 : vector<8x128xf32>
    %cst_5 = arith.constant dense<0.000000e+00> : vector<8xf32>
    %7 = vector.multi_reduction <add>, %6, %cst_5 [1] : vector<8x128xf32> to vector<8xf32>
    %8 = vector.shape_cast %7 : vector<8xf32> to vector<8x1xf32>
    %9 = arith.mulf %6, %6 : vector<8x128xf32>
    %cst_6 = arith.constant dense<0.000000e+00> : vector<8xf32>
    %10 = vector.multi_reduction <add>, %9, %cst_6 [1] : vector<8x128xf32> to vector<8xf32>
    %11 = vector.shape_cast %10 : vector<8xf32> to vector<8x1xf32>
    %cst_7 = arith.constant 3.125000e-02 : f32
    %12 = vector.broadcast %cst_7 : f32 to vector<8x1xf32>
    %13 = arith.mulf %8, %12 : vector<8x1xf32>
    %cst_8 = arith.constant 3.125000e-02 : f32
    %14 = vector.broadcast %cst_8 : f32 to vector<8x1xf32>
    %15 = arith.mulf %11, %14 : vector<8x1xf32>
    %16 = arith.mulf %13, %13 : vector<8x1xf32>
    %17 = arith.subf %15, %16 : vector<8x1xf32>
    %cst_9 = arith.constant 0.000000e+00 : f32
    %18 = vector.broadcast %cst_9 : f32 to vector<8x1xf32>
    %19 = arith.maximumf %17, %18 : vector<8x1xf32>
    %20 = vector.broadcast %13 : vector<8x1xf32> to vector<8x128xf32>
    %21 = arith.subf %6, %20 : vector<8x128xf32>
    %cst_10 = arith.constant 9.99999974E-6 : f32
    %22 = vector.broadcast %cst_10 : f32 to vector<8x1xf32>
    %23 = arith.addf %19, %22 : vector<8x1xf32>
    %24 = math.rsqrt %23 : vector<8x1xf32>
    %25 = vector.broadcast %24 : vector<8x1xf32> to vector<8x128xf32>
    %26 = arith.mulf %21, %25 : vector<8x128xf32>
    %c1 = arith.constant 1 : index
    %c0_11 = arith.constant 0 : index
    %27 = vector.load %arg3[%c1, %c0_11] : memref<3x128xf32, #tpu.memory_space<vmem>>, vector<1x128xf32>
    %28 = vector.broadcast %27 : vector<1x128xf32> to vector<8x128xf32>
    %29 = arith.mulf %26, %28 : vector<8x128xf32>
    %c2 = arith.constant 2 : index
    %c0_12 = arith.constant 0 : index
    %30 = vector.load %arg3[%c2, %c0_12] : memref<3x128xf32, #tpu.memory_space<vmem>>, vector<1x128xf32>
    %31 = vector.broadcast %30 : vector<1x128xf32> to vector<8x128xf32>
    %32 = arith.addf %29, %31 : vector<8x128xf32>
    %cst_13 = arith.constant 0.000000e+00 : f32
    %33 = vector.broadcast %cst_13 : f32 to vector<8x128xf32>
    %34 = arith.cmpf oge, %32, %33 : vector<8x128xf32>
    %cst_14 = arith.constant 2.000000e-01 : f32
    %35 = vector.broadcast %cst_14 : f32 to vector<8x128xf32>
    %36 = arith.mulf %35, %32 : vector<8x128xf32>
    %37 = arith.select %34, %32, %36 : vector<8x128xi1>, vector<8x128xf32>
    %38 = arith.truncf %37 : vector<8x128xf32> to vector<8x128xbf16>
    %c0_15 = arith.constant 0 : index
    %c0_16 = arith.constant 0 : index
    %39 = vector.load %arg4[%c0_15, %c0_16] : memref<128x128xbf16, #tpu.memory_space<vmem>>, vector<128x128xbf16>
    %cst_17 = arith.constant dense<0.000000e+00> : vector<8x128xf32>
    %40 = tpu.matmul %38, %39, %cst_17 {dimension_numbers = #tpu.dot_dimension_numbers<[1], [0], [0], [1], [0, 0, 1, 1], [], []>} : vector<8x128xbf16>, vector<128x128xbf16>, vector<8x128xf32> -> vector<8x128xf32>
    %c0_18 = arith.constant 0 : index
    %c0_19 = arith.constant 0 : index
    %41 = vector.load %arg5[%c0_18, %c0_19] : memref<3x128xf32, #tpu.memory_space<vmem>>, vector<1x128xf32>
    %42 = vector.broadcast %41 : vector<1x128xf32> to vector<8x128xf32>
    %43 = arith.addf %40, %42 : vector<8x128xf32>
    %cst_20 = arith.constant dense<0.000000e+00> : vector<8xf32>
    %44 = vector.multi_reduction <add>, %43, %cst_20 [1] : vector<8x128xf32> to vector<8xf32>
    %45 = vector.shape_cast %44 : vector<8xf32> to vector<8x1xf32>
    %46 = arith.mulf %43, %43 : vector<8x128xf32>
    %cst_21 = arith.constant dense<0.000000e+00> : vector<8xf32>
    %47 = vector.multi_reduction <add>, %46, %cst_21 [1] : vector<8x128xf32> to vector<8xf32>
    %48 = vector.shape_cast %47 : vector<8xf32> to vector<8x1xf32>
    %cst_22 = arith.constant 3.125000e-02 : f32
    %49 = vector.broadcast %cst_22 : f32 to vector<8x1xf32>
    %50 = arith.mulf %45, %49 : vector<8x1xf32>
    %cst_23 = arith.constant 3.125000e-02 : f32
    %51 = vector.broadcast %cst_23 : f32 to vector<8x1xf32>
    %52 = arith.mulf %48, %51 : vector<8x1xf32>
    %53 = arith.mulf %50, %50 : vector<8x1xf32>
    %54 = arith.subf %52, %53 : vector<8x1xf32>
    %cst_24 = arith.constant 0.000000e+00 : f32
    %55 = vector.broadcast %cst_24 : f32 to vector<8x1xf32>
    %56 = arith.maximumf %54, %55 : vector<8x1xf32>
    %57 = vector.broadcast %50 : vector<8x1xf32> to vector<8x128xf32>
    %58 = arith.subf %43, %57 : vector<8x128xf32>
    %cst_25 = arith.constant 9.99999974E-6 : f32
    %59 = vector.broadcast %cst_25 : f32 to vector<8x1xf32>
    %60 = arith.addf %56, %59 : vector<8x1xf32>
    %61 = math.rsqrt %60 : vector<8x1xf32>
    %62 = vector.broadcast %61 : vector<8x1xf32> to vector<8x128xf32>
    %63 = arith.mulf %58, %62 : vector<8x128xf32>
    %c1_26 = arith.constant 1 : index
    %c0_27 = arith.constant 0 : index
    %64 = vector.load %arg5[%c1_26, %c0_27] : memref<3x128xf32, #tpu.memory_space<vmem>>, vector<1x128xf32>
    %65 = vector.broadcast %64 : vector<1x128xf32> to vector<8x128xf32>
    %66 = arith.mulf %63, %65 : vector<8x128xf32>
    %c2_28 = arith.constant 2 : index
    %c0_29 = arith.constant 0 : index
    %67 = vector.load %arg5[%c2_28, %c0_29] : memref<3x128xf32, #tpu.memory_space<vmem>>, vector<1x128xf32>
    %68 = vector.broadcast %67 : vector<1x128xf32> to vector<8x128xf32>
    %69 = arith.addf %66, %68 : vector<8x128xf32>
    %cst_30 = arith.constant 0.000000e+00 : f32
    %70 = vector.broadcast %cst_30 : f32 to vector<8x128xf32>
    %71 = arith.cmpf oge, %69, %70 : vector<8x128xf32>
    %cst_31 = arith.constant 2.000000e-01 : f32
    %72 = vector.broadcast %cst_31 : f32 to vector<8x128xf32>
    %73 = arith.mulf %72, %69 : vector<8x128xf32>
    %74 = arith.select %71, %69, %73 : vector<8x128xi1>, vector<8x128xf32>
    %75 = arith.truncf %74 : vector<8x128xf32> to vector<8x128xbf16>
    %c0_32 = arith.constant 0 : index
    %c0_33 = arith.constant 0 : index
    %76 = vector.load %arg6[%c0_32, %c0_33] : memref<128x128xbf16, #tpu.memory_space<vmem>>, vector<128x128xbf16>
    %cst_34 = arith.constant dense<0.000000e+00> : vector<8x128xf32>
    %77 = tpu.matmul %75, %76, %cst_34 {dimension_numbers = #tpu.dot_dimension_numbers<[1], [0], [0], [1], [0, 0, 1, 1], [], []>} : vector<8x128xbf16>, vector<128x128xbf16>, vector<8x128xf32> -> vector<8x128xf32>
    %c0_35 = arith.constant 0 : index
    %c0_36 = arith.constant 0 : index
    %78 = vector.load %arg7[%c0_35, %c0_36] : memref<3x128xf32, #tpu.memory_space<vmem>>, vector<1x128xf32>
    %79 = vector.broadcast %78 : vector<1x128xf32> to vector<8x128xf32>
    %80 = arith.addf %77, %79 : vector<8x128xf32>
    %cst_37 = arith.constant dense<0.000000e+00> : vector<8xf32>
    %81 = vector.multi_reduction <add>, %80, %cst_37 [1] : vector<8x128xf32> to vector<8xf32>
    %82 = vector.shape_cast %81 : vector<8xf32> to vector<8x1xf32>
    %83 = arith.mulf %80, %80 : vector<8x128xf32>
    %cst_38 = arith.constant dense<0.000000e+00> : vector<8xf32>
    %84 = vector.multi_reduction <add>, %83, %cst_38 [1] : vector<8x128xf32> to vector<8xf32>
    %85 = vector.shape_cast %84 : vector<8xf32> to vector<8x1xf32>
    %cst_39 = arith.constant 3.125000e-02 : f32
    %86 = vector.broadcast %cst_39 : f32 to vector<8x1xf32>
    %87 = arith.mulf %82, %86 : vector<8x1xf32>
    %cst_40 = arith.constant 3.125000e-02 : f32
    %88 = vector.broadcast %cst_40 : f32 to vector<8x1xf32>
    %89 = arith.mulf %85, %88 : vector<8x1xf32>
    %90 = arith.mulf %87, %87 : vector<8x1xf32>
    %91 = arith.subf %89, %90 : vector<8x1xf32>
    %cst_41 = arith.constant 0.000000e+00 : f32
    %92 = vector.broadcast %cst_41 : f32 to vector<8x1xf32>
    %93 = arith.maximumf %91, %92 : vector<8x1xf32>
    %94 = vector.broadcast %87 : vector<8x1xf32> to vector<8x128xf32>
    %95 = arith.subf %80, %94 : vector<8x128xf32>
    %cst_42 = arith.constant 9.99999974E-6 : f32
    %96 = vector.broadcast %cst_42 : f32 to vector<8x1xf32>
    %97 = arith.addf %93, %96 : vector<8x1xf32>
    %98 = math.rsqrt %97 : vector<8x1xf32>
    %99 = vector.broadcast %98 : vector<8x1xf32> to vector<8x128xf32>
    %100 = arith.mulf %95, %99 : vector<8x128xf32>
    %c1_43 = arith.constant 1 : index
    %c0_44 = arith.constant 0 : index
    %101 = vector.load %arg7[%c1_43, %c0_44] : memref<3x128xf32, #tpu.memory_space<vmem>>, vector<1x128xf32>
    %102 = vector.broadcast %101 : vector<1x128xf32> to vector<8x128xf32>
    %103 = arith.mulf %100, %102 : vector<8x128xf32>
    %c2_45 = arith.constant 2 : index
    %c0_46 = arith.constant 0 : index
    %104 = vector.load %arg7[%c2_45, %c0_46] : memref<3x128xf32, #tpu.memory_space<vmem>>, vector<1x128xf32>
    %105 = vector.broadcast %104 : vector<1x128xf32> to vector<8x128xf32>
    %106 = arith.addf %103, %105 : vector<8x128xf32>
    %cst_47 = arith.constant 0.000000e+00 : f32
    %107 = vector.broadcast %cst_47 : f32 to vector<8x128xf32>
    %108 = arith.cmpf oge, %106, %107 : vector<8x128xf32>
    %cst_48 = arith.constant 2.000000e-01 : f32
    %109 = vector.broadcast %cst_48 : f32 to vector<8x128xf32>
    %110 = arith.mulf %109, %106 : vector<8x128xf32>
    %111 = arith.select %108, %106, %110 : vector<8x128xi1>, vector<8x128xf32>
    %112 = arith.truncf %111 : vector<8x128xf32> to vector<8x128xbf16>
    %c0_49 = arith.constant 0 : index
    %c0_50 = arith.constant 0 : index
    %113 = vector.load %arg8[%c0_49, %c0_50] : memref<128x128xbf16, #tpu.memory_space<vmem>>, vector<128x128xbf16>
    %cst_51 = arith.constant dense<0.000000e+00> : vector<8x128xf32>
    %114 = tpu.matmul %112, %113, %cst_51 {dimension_numbers = #tpu.dot_dimension_numbers<[1], [0], [0], [1], [0, 0, 1, 1], [], []>} : vector<8x128xbf16>, vector<128x128xbf16>, vector<8x128xf32> -> vector<8x128xf32>
    %c0_52 = arith.constant 0 : index
    %c0_53 = arith.constant 0 : index
    %115 = vector.load %arg9[%c0_52, %c0_53] : memref<3x128xf32, #tpu.memory_space<vmem>>, vector<1x128xf32>
    %116 = vector.broadcast %115 : vector<1x128xf32> to vector<8x128xf32>
    %117 = arith.addf %114, %116 : vector<8x128xf32>
    %cst_54 = arith.constant dense<0.000000e+00> : vector<8xf32>
    %118 = vector.multi_reduction <add>, %117, %cst_54 [1] : vector<8x128xf32> to vector<8xf32>
    %119 = vector.shape_cast %118 : vector<8xf32> to vector<8x1xf32>
    %120 = arith.mulf %117, %117 : vector<8x128xf32>
    %cst_55 = arith.constant dense<0.000000e+00> : vector<8xf32>
    %121 = vector.multi_reduction <add>, %120, %cst_55 [1] : vector<8x128xf32> to vector<8xf32>
    %122 = vector.shape_cast %121 : vector<8xf32> to vector<8x1xf32>
    %cst_56 = arith.constant 1.250000e-01 : f32
    %123 = vector.broadcast %cst_56 : f32 to vector<8x1xf32>
    %124 = arith.mulf %119, %123 : vector<8x1xf32>
    %cst_57 = arith.constant 1.250000e-01 : f32
    %125 = vector.broadcast %cst_57 : f32 to vector<8x1xf32>
    %126 = arith.mulf %122, %125 : vector<8x1xf32>
    %127 = arith.mulf %124, %124 : vector<8x1xf32>
    %128 = arith.subf %126, %127 : vector<8x1xf32>
    %cst_58 = arith.constant 0.000000e+00 : f32
    %129 = vector.broadcast %cst_58 : f32 to vector<8x1xf32>
    %130 = arith.maximumf %128, %129 : vector<8x1xf32>
    %131 = vector.broadcast %124 : vector<8x1xf32> to vector<8x128xf32>
    %132 = arith.subf %117, %131 : vector<8x128xf32>
    %cst_59 = arith.constant 9.99999974E-6 : f32
    %133 = vector.broadcast %cst_59 : f32 to vector<8x1xf32>
    %134 = arith.addf %130, %133 : vector<8x1xf32>
    %135 = math.rsqrt %134 : vector<8x1xf32>
    %136 = vector.broadcast %135 : vector<8x1xf32> to vector<8x128xf32>
    %137 = arith.mulf %132, %136 : vector<8x128xf32>
    %c1_60 = arith.constant 1 : index
    %c0_61 = arith.constant 0 : index
    %138 = vector.load %arg9[%c1_60, %c0_61] : memref<3x128xf32, #tpu.memory_space<vmem>>, vector<1x128xf32>
    %139 = vector.broadcast %138 : vector<1x128xf32> to vector<8x128xf32>
    %140 = arith.mulf %137, %139 : vector<8x128xf32>
    %c2_62 = arith.constant 2 : index
    %c0_63 = arith.constant 0 : index
    %141 = vector.load %arg9[%c2_62, %c0_63] : memref<3x128xf32, #tpu.memory_space<vmem>>, vector<1x128xf32>
    %142 = vector.broadcast %141 : vector<1x128xf32> to vector<8x128xf32>
    %143 = arith.addf %140, %142 : vector<8x128xf32>
    %cst_64 = arith.constant 0.000000e+00 : f32
    %144 = vector.broadcast %cst_64 : f32 to vector<8x128xf32>
    %145 = arith.cmpf oge, %143, %144 : vector<8x128xf32>
    %cst_65 = arith.constant 2.000000e-01 : f32
    %146 = vector.broadcast %cst_65 : f32 to vector<8x128xf32>
    %147 = arith.mulf %146, %143 : vector<8x128xf32>
    %148 = arith.select %145, %143, %147 : vector<8x128xi1>, vector<8x128xf32>
    %c0_66 = arith.constant 0 : index
    %c0_67 = arith.constant 0 : index
    %149 = vector.load %arg10[%c0_66, %c0_67] : memref<8x128xf32, #tpu.memory_space<vmem>>, vector<8x128xf32>
    tpu.vector_store %arg10[%c0_66, %c0_67], %148 {strides = array<i32>} : memref<8x128xf32, #tpu.memory_space<vmem>>, vector<8x128xf32>,
    return
  }
  func.func @transform_0(%arg0: i32) -> (i32, i32) {
    %c0_i32 = arith.constant 0 : i32
    %c0_i32_0 = arith.constant 0 : i32
    return %arg0, %c0_i32 : i32, i32
  }
  func.func @transform_1(%arg0: i32) -> (i32, i32) {
    %c0_i32 = arith.constant 0 : i32
    %c0_i32_0 = arith.constant 0 : i32
    %c0_i32_1 = arith.constant 0 : i32
    return %c0_i32, %c0_i32_0 : i32, i32
  }
  func.func @transform_2(%arg0: i32) -> (i32, i32) {
    %c0_i32 = arith.constant 0 : i32
    %c0_i32_0 = arith.constant 0 : i32
    %c0_i32_1 = arith.constant 0 : i32
    return %c0_i32, %c0_i32_0 : i32, i32
  }
  func.func @transform_3(%arg0: i32) -> (i32, i32) {
    %c0_i32 = arith.constant 0 : i32
    %c0_i32_0 = arith.constant 0 : i32
    %c0_i32_1 = arith.constant 0 : i32
    return %c0_i32, %c0_i32_0 : i32, i32
  }
  func.func @transform_4(%arg0: i32) -> (i32, i32) {
    %c0_i32 = arith.constant 0 : i32
    %c0_i32_0 = arith.constant 0 : i32
    %c0_i32_1 = arith.constant 0 : i32
    return %c0_i32, %c0_i32_0 : i32, i32
  }
  func.func @transform_5(%arg0: i32) -> (i32, i32) {
    %c0_i32 = arith.constant 0 : i32
    %c0_i32_0 = arith.constant 0 : i32
    %c0_i32_1 = arith.constant 0 : i32
    return %c0_i32, %c0_i32_0 : i32, i32
  }
  func.func @transform_6(%arg0: i32) -> (i32, i32) {
    %c0_i32 = arith.constant 0 : i32
    %c0_i32_0 = arith.constant 0 : i32
    %c0_i32_1 = arith.constant 0 : i32
    return %c0_i32, %c0_i32_0 : i32, i32
  }
  func.func @transform_7(%arg0: i32) -> (i32, i32) {
    %c0_i32 = arith.constant 0 : i32
    %c0_i32_0 = arith.constant 0 : i32
    %c0_i32_1 = arith.constant 0 : i32
    return %c0_i32, %c0_i32_0 : i32, i32
  }
  func.func @transform_8(%arg0: i32) -> (i32, i32) {
    %c0_i32 = arith.constant 0 : i32
    %c0_i32_0 = arith.constant 0 : i32
    %c0_i32_1 = arith.constant 0 : i32
    return %c0_i32, %c0_i32_0 : i32, i32
  }
  func.func @transform_9(%arg0: i32) -> (i32, i32) {
    %c0_i32 = arith.constant 0 : i32
    %c0_i32_0 = arith.constant 0 : i32
    return %arg0, %c0_i32 : i32, i32
  }
}

module attributes {stable_mosaic.version = 11 : i64} {
  func.func @kernel(%arg0: i32, %arg1: memref<8x128xf32, #tpu.memory_space<vmem>>, %arg2: memref<128x128xbf16, #tpu.memory_space<vmem>>, %arg3: memref<3x128xf32, #tpu.memory_space<vmem>>, %arg4: memref<128x128xbf16, #tpu.memory_space<vmem>>, %arg5: memref<3x128xf32, #tpu.memory_space<vmem>>, %arg6: memref<128x128xbf16, #tpu.memory_space<vmem>>, %arg7: memref<3x128xf32, #tpu.memory_space<vmem>>, %arg8: memref<128x128xbf16, #tpu.memory_space<vmem>>, %arg9: memref<3x128xf32, #tpu.memory_space<vmem>>, %arg10: memref<8x128xf32, #tpu.memory_space<vmem>>) attributes {dimension_semantics = [#tpu.dimension_semantics<parallel>], iteration_bounds = array<i64: 1>, scalar_prefetch = 0 : i64, scratch_operands = 0 : i64, tpu.core_type = #tpu.core_type<tc>, window_params = [{transform_indices = @transform_0, window_bounds = array<i64: 8, 128>}, {pipeline_mode = #tpu.pipeline_mode<synchronous>, transform_indices = @transform_1, window_bounds = array<i64: 128, 128>}, {pipeline_mode = #tpu.pipeline_mode<synchronous>, transform_indices = @transform_2, window_bounds = array<i64: 3, 128>}, {pipeline_mode = #tpu.pipeline_mode<synchronous>, transform_indices = @transform_3, window_bounds = array<i64: 128, 128>}, {pipeline_mode = #tpu.pipeline_mode<synchronous>, transform_indices = @transform_4, window_bounds = array<i64: 3, 128>}, {pipeline_mode = #tpu.pipeline_mode<synchronous>, transform_indices = @transform_5, window_bounds = array<i64: 128, 128>}, {pipeline_mode = #tpu.pipeline_mode<synchronous>, transform_indices = @transform_6, window_bounds = array<i64: 3, 128>}, {pipeline_mode = #tpu.pipeline_mode<synchronous>, transform_indices = @transform_7, window_bounds = array<i64: 128, 128>}, {pipeline_mode = #tpu.pipeline_mode<synchronous>, transform_indices = @transform_8, window_bounds = array<i64: 3, 128>}, {transform_indices = @transform_9, window_bounds = array<i64: 8, 128>}]} {
    %c0 = arith.constant 0 : index
    %c0_0 = arith.constant 0 : index
    %0 = vector.load %arg1[%c0, %c0_0] : memref<8x128xf32, #tpu.memory_space<vmem>>, vector<8x128xf32>
    %1 = arith.truncf %0 : vector<8x128xf32> to vector<8x128xbf16>
    %c0_1 = arith.constant 0 : index
    %c0_2 = arith.constant 0 : index
    %2 = vector.load %arg2[%c0_1, %c0_2] : memref<128x128xbf16, #tpu.memory_space<vmem>>, vector<128x128xbf16>
    %cst = arith.constant dense<0.000000e+00> : vector<8x128xf32>
    %3 = tpu.matmul %1, %2, %cst {dimension_numbers = #tpu.dot_dimension_numbers<[1], [0], [0], [1], [0, 0, 1, 1], [], []>} : vector<8x128xbf16>, vector<128x128xbf16>, vector<8x128xf32> -> vector<8x128xf32>
    %c0_3 = arith.constant 0 : index
    %c0_4 = arith.constant 0 : index
    %4 = vector.load %arg3[%c0_3, %c0_4] : memref<3x128xf32, #tpu.memory_space<vmem>>, vector<1x128xf32>
    %5 = vector.broadcast %4 : vector<1x128xf32> to vector<8x128xf32>
    %6 = arith.addf %3, %5 : vector<8x128xf32>
    %cst_5 = arith.constant dense<0.000000e+00> : vector<8xf32>
    %7 = vector.multi_reduction <add>, %6, %cst_5 [1] : vector<8x128xf32> to vector<8xf32>
    %8 = vector.shape_cast %7 : vector<8xf32> to vector<8x1xf32>
    %9 = arith.mulf %6, %6 : vector<8x128xf32>
    %cst_6 = arith.constant dense<0.000000e+00> : vector<8xf32>
    %10 = vector.multi_reduction <add>, %9, %cst_6 [1] : vector<8x128xf32> to vector<8xf32>
    %11 = vector.shape_cast %10 : vector<8xf32> to vector<8x1xf32>
    %cst_7 = arith.constant 3.125000e-02 : f32
    %12 = vector.broadcast %cst_7 : f32 to vector<8x1xf32>
    %13 = arith.mulf %8, %12 : vector<8x1xf32>
    %cst_8 = arith.constant 3.125000e-02 : f32
    %14 = vector.broadcast %cst_8 : f32 to vector<8x1xf32>
    %15 = arith.mulf %11, %14 : vector<8x1xf32>
    %16 = arith.mulf %13, %13 : vector<8x1xf32>
    %17 = arith.subf %15, %16 : vector<8x1xf32>
    %cst_9 = arith.constant 0.000000e+00 : f32
    %18 = vector.broadcast %cst_9 : f32 to vector<8x1xf32>
    %19 = arith.maximumf %17, %18 : vector<8x1xf32>
    %20 = vector.broadcast %13 : vector<8x1xf32> to vector<8x128xf32>
    %21 = arith.subf %6, %20 : vector<8x128xf32>
    %cst_10 = arith.constant 9.99999974E-6 : f32
    %22 = vector.broadcast %cst_10 : f32 to vector<8x1xf32>
    %23 = arith.addf %19, %22 : vector<8x1xf32>
    %24 = math.rsqrt %23 : vector<8x1xf32>
    %25 = vector.broadcast %24 : vector<8x1xf32> to vector<8x128xf32>
    %26 = arith.mulf %21, %25 : vector<8x128xf32>
    %c1 = arith.constant 1 : index
    %c0_11 = arith.constant 0 : index
    %27 = vector.load %arg3[%c1, %c0_11] : memref<3x128xf32, #tpu.memory_space<vmem>>, vector<1x128xf32>
    %28 = vector.broadcast %27 : vector<1x128xf32> to vector<8x128xf32>
    %29 = arith.mulf %26, %28 : vector<8x128xf32>
    %c2 = arith.constant 2 : index
    %c0_12 = arith.constant 0 : index
    %30 = vector.load %arg3[%c2, %c0_12] : memref<3x128xf32, #tpu.memory_space<vmem>>, vector<1x128xf32>
    %31 = vector.broadcast %30 : vector<1x128xf32> to vector<8x128xf32>
    %32 = arith.addf %29, %31 : vector<8x128xf32>
    %cst_13 = arith.constant 0.000000e+00 : f32
    %33 = vector.broadcast %cst_13 : f32 to vector<8x128xf32>
    %34 = arith.cmpf oge, %32, %33 : vector<8x128xf32>
    %cst_14 = arith.constant 2.000000e-01 : f32
    %35 = vector.broadcast %cst_14 : f32 to vector<8x128xf32>
    %36 = arith.mulf %35, %32 : vector<8x128xf32>
    %37 = arith.select %34, %32, %36 : vector<8x128xi1>, vector<8x128xf32>
    %38 = arith.truncf %37 : vector<8x128xf32> to vector<8x128xbf16>
    %c0_15 = arith.constant 0 : index
    %c0_16 = arith.constant 0 : index
    %39 = vector.load %arg4[%c0_15, %c0_16] : memref<128x128xbf16, #tpu.memory_space<vmem>>, vector<128x128xbf16>
    %cst_17 = arith.constant dense<0.000000e+00> : vector<8x128xf32>
    %40 = tpu.matmul %38, %39, %cst_17 {dimension_numbers = #tpu.dot_dimension_numbers<[1], [0], [0], [1], [0, 0, 1, 1], [], []>} : vector<8x128xbf16>, vector<128x128xbf16>, vector<8x128xf32> -> vector<8x128xf32>
    %c0_18 = arith.constant 0 : index
    %c0_19 = arith.constant 0 : index
    %41 = vector.load %arg5[%c0_18, %c0_19] : memref<3x128xf32, #tpu.memory_space<vmem>>, vector<1x128xf32>
    %42 = vector.broadcast %41 : vector<1x128xf32> to vector<8x128xf32>
    %43 = arith.addf %40, %42 : vector<8x128xf32>
    %cst_20 = arith.constant dense<0.000000e+00> : vector<8xf32>
    %44 = vector.multi_reduction <add>, %43, %cst_20 [1] : vector<8x128xf32> to vector<8xf32>
    %45 = vector.shape_cast %44 : vector<8xf32> to vector<8x1xf32>
    %46 = arith.mulf %43, %43 : vector<8x128xf32>
    %cst_21 = arith.constant dense<0.000000e+00> : vector<8xf32>
    %47 = vector.multi_reduction <add>, %46, %cst_21 [1] : vector<8x128xf32> to vector<8xf32>
    %48 = vector.shape_cast %47 : vector<8xf32> to vector<8x1xf32>
    %cst_22 = arith.constant 3.125000e-02 : f32
    %49 = vector.broadcast %cst_22 : f32 to vector<8x1xf32>
    %50 = arith.mulf %45, %49 : vector<8x1xf32>
    %cst_23 = arith.constant 3.125000e-02 : f32
    %51 = vector.broadcast %cst_23 : f32 to vector<8x1xf32>
    %52 = arith.mulf %48, %51 : vector<8x1xf32>
    %53 = arith.mulf %50, %50 : vector<8x1xf32>
    %54 = arith.subf %52, %53 : vector<8x1xf32>
    %cst_24 = arith.constant 0.000000e+00 : f32
    %55 = vector.broadcast %cst_24 : f32 to vector<8x1xf32>
    %56 = arith.maximumf %54, %55 : vector<8x1xf32>
    %57 = vector.broadcast %50 : vector<8x1xf32> to vector<8x128xf32>
    %58 = arith.subf %43, %57 : vector<8x128xf32>
    %cst_25 = arith.constant 9.99999974E-6 : f32
    %59 = vector.broadcast %cst_25 : f32 to vector<8x1xf32>
    %60 = arith.addf %56, %59 : vector<8x1xf32>
    %61 = math.rsqrt %60 : vector<8x1xf32>
    %62 = vector.broadcast %61 : vector<8x1xf32> to vector<8x128xf32>
    %63 = arith.mulf %58, %62 : vector<8x128xf32>
    %c1_26 = arith.constant 1 : index
    %c0_27 = arith.constant 0 : index
    %64 = vector.load %arg5[%c1_26, %c0_27] : memref<3x128xf32, #tpu.memory_space<vmem>>, vector<1x128xf32>
    %65 = vector.broadcast %64 : vector<1x128xf32> to vector<8x128xf32>
    %66 = arith.mulf %63, %65 : vector<8x128xf32>
    %c2_28 = arith.constant 2 : index
    %c0_29 = arith.constant 0 : index
    %67 = vector.load %arg5[%c2_28, %c0_29] : memref<3x128xf32, #tpu.memory_space<vmem>>, vector<1x128xf32>
    %68 = vector.broadcast %67 : vector<1x128xf32> to vector<8x128xf32>
    %69 = arith.addf %66, %68 : vector<8x128xf32>
    %cst_30 = arith.constant 0.000000e+00 : f32
    %70 = vector.broadcast %cst_30 : f32 to vector<8x128xf32>
    %71 = arith.cmpf oge, %69, %70 : vector<8x128xf32>
    %cst_31 = arith.constant 2.000000e-01 : f32
    %72 = vector.broadcast %cst_31 : f32 to vector<8x128xf32>
    %73 = arith.mulf %72, %69 : vector<8x128xf32>
    %74 = arith.select %71, %69, %73 : vector<8x128xi1>, vector<8x128xf32>
    %75 = arith.truncf %74 : vector<8x128xf32> to vector<8x128xbf16>
    %c0_32 = arith.constant 0 : index
    %c0_33 = arith.constant 0 : index
    %76 = vector.load %arg6[%c0_32, %c0_33] : memref<128x128xbf16, #tpu.memory_space<vmem>>, vector<128x128xbf16>
    %cst_34 = arith.constant dense<0.000000e+00> : vector<8x128xf32>
    %77 = tpu.matmul %75, %76, %cst_34 {dimension_numbers = #tpu.dot_dimension_numbers<[1], [0], [0], [1], [0, 0, 1, 1], [], []>} : vector<8x128xbf16>, vector<128x128xbf16>, vector<8x128xf32> -> vector<8x128xf32>
    %c0_35 = arith.constant 0 : index
    %c0_36 = arith.constant 0 : index
    %78 = vector.load %arg7[%c0_35, %c0_36] : memref<3x128xf32, #tpu.memory_space<vmem>>, vector<1x128xf32>
    %79 = vector.broadcast %78 : vector<1x128xf32> to vector<8x128xf32>
    %80 = arith.addf %77, %79 : vector<8x128xf32>
    %cst_37 = arith.constant dense<0.000000e+00> : vector<8xf32>
    %81 = vector.multi_reduction <add>, %80, %cst_37 [1] : vector<8x128xf32> to vector<8xf32>
    %82 = vector.shape_cast %81 : vector<8xf32> to vector<8x1xf32>
    %83 = arith.mulf %80, %80 : vector<8x128xf32>
    %cst_38 = arith.constant dense<0.000000e+00> : vector<8xf32>
    %84 = vector.multi_reduction <add>, %83, %cst_38 [1] : vector<8x128xf32> to vector<8xf32>
    %85 = vector.shape_cast %84 : vector<8xf32> to vector<8x1xf32>
    %cst_39 = arith.constant 3.125000e-02 : f32
    %86 = vector.broadcast %cst_39 : f32 to vector<8x1xf32>
    %87 = arith.mulf %82, %86 : vector<8x1xf32>
    %cst_40 = arith.constant 3.125000e-02 : f32
    %88 = vector.broadcast %cst_40 : f32 to vector<8x1xf32>
    %89 = arith.mulf %85, %88 : vector<8x1xf32>
    %90 = arith.mulf %87, %87 : vector<8x1xf32>
    %91 = arith.subf %89, %90 : vector<8x1xf32>
    %cst_41 = arith.constant 0.000000e+00 : f32
    %92 = vector.broadcast %cst_41 : f32 to vector<8x1xf32>
    %93 = arith.maximumf %91, %92 : vector<8x1xf32>
    %94 = vector.broadcast %87 : vector<8x1xf32> to vector<8x128xf32>
    %95 = arith.subf %80, %94 : vector<8x128xf32>
    %cst_42 = arith.constant 9.99999974E-6 : f32
    %96 = vector.broadcast %cst_42 : f32 to vector<8x1xf32>
    %97 = arith.addf %93, %96 : vector<8x1xf32>
    %98 = math.rsqrt %97 : vector<8x1xf32>
    %99 = vector.broadcast %98 : vector<8x1xf32> to vector<8x128xf32>
    %100 = arith.mulf %95, %99 : vector<8x128xf32>
    %c1_43 = arith.constant 1 : index
    %c0_44 = arith.constant 0 : index
    %101 = vector.load %arg7[%c1_43, %c0_44] : memref<3x128xf32, #tpu.memory_space<vmem>>, vector<1x128xf32>
    %102 = vector.broadcast %101 : vector<1x128xf32> to vector<8x128xf32>
    %103 = arith.mulf %100, %102 : vector<8x128xf32>
    %c2_45 = arith.constant 2 : index
    %c0_46 = arith.constant 0 : index
    %104 = vector.load %arg7[%c2_45, %c0_46] : memref<3x128xf32, #tpu.memory_space<vmem>>, vector<1x128xf32>
    %105 = vector.broadcast %104 : vector<1x128xf32> to vector<8x128xf32>
    %106 = arith.addf %103, %105 : vector<8x128xf32>
    %cst_47 = arith.constant 0.000000e+00 : f32
    %107 = vector.broadcast %cst_47 : f32 to vector<8x128xf32>
    %108 = arith.cmpf oge, %106, %107 : vector<8x128xf32>
    %cst_48 = arith.constant 2.000000e-01 : f32
    %109 = vector.broadcast %cst_48 : f32 to vector<8x128xf32>
    %110 = arith.mulf %109, %106 : vector<8x128xf32>
    %111 = arith.select %108, %106, %110 : vector<8x128xi1>, vector<8x128xf32>
    %112 = arith.truncf %111 : vector<8x128xf32> to vector<8x128xbf16>
    %c0_49 = arith.constant 0 : index
    %c0_50 = arith.constant 0 : index
    %113 = vector.load %arg8[%c0_49, %c0_50] : memref<128x128xbf16, #tpu.memory_space<vmem>>, vector<128x128xbf16>
    %cst_51 = arith.constant dense<0.000000e+00> : vector<8x128xf32>
    %114 = tpu.matmul %112, %113, %cst_51 {dimension_numbers = #tpu.dot_dimension_numbers<[1], [0], [0], [1], [0, 0, 1, 1], [], []>} : vector<8x128xbf16>, vector<128x128xbf16>, vector<8x128xf32> -> vector<8x128xf32>
    %c0_52 = arith.constant 0 : index
    %c0_53 = arith.constant 0 : index
    %115 = vector.load %arg9[%c0_52, %c0_53] : memref<3x128xf32, #tpu.memory_space<vmem>>, vector<1x128xf32>
    %116 = vector.broadcast %115 : vector<1x128xf32> to vector<8x128xf32>
    %117 = arith.addf %114, %116 : vector<8x128xf32>
    %cst_54 = arith.constant dense<0.000000e+00> : vector<8xf32>
    %118 = vector.multi_reduction <add>, %117, %cst_54 [1] : vector<8x128xf32> to vector<8xf32>
    %119 = vector.shape_cast %118 : vector<8xf32> to vector<8x1xf32>
    %120 = arith.mulf %117, %117 : vector<8x128xf32>
    %cst_55 = arith.constant dense<0.000000e+00> : vector<8xf32>
    %121 = vector.multi_reduction <add>, %120, %cst_55 [1] : vector<8x128xf32> to vector<8xf32>
    %122 = vector.shape_cast %121 : vector<8xf32> to vector<8x1xf32>
    %cst_56 = arith.constant 1.250000e-01 : f32
    %123 = vector.broadcast %cst_56 : f32 to vector<8x1xf32>
    %124 = arith.mulf %119, %123 : vector<8x1xf32>
    %cst_57 = arith.constant 1.250000e-01 : f32
    %125 = vector.broadcast %cst_57 : f32 to vector<8x1xf32>
    %126 = arith.mulf %122, %125 : vector<8x1xf32>
    %127 = arith.mulf %124, %124 : vector<8x1xf32>
    %128 = arith.subf %126, %127 : vector<8x1xf32>
    %cst_58 = arith.constant 0.000000e+00 : f32
    %129 = vector.broadcast %cst_58 : f32 to vector<8x1xf32>
    %130 = arith.maximumf %128, %129 : vector<8x1xf32>
    %131 = vector.broadcast %124 : vector<8x1xf32> to vector<8x128xf32>
    %132 = arith.subf %117, %131 : vector<8x128xf32>
    %cst_59 = arith.constant 9.99999974E-6 : f32
    %133 = vector.broadcast %cst_59 : f32 to vector<8x1xf32>
    %134 = arith.addf %130, %133 : vector<8x1xf32>
    %135 = math.rsqrt %134 : vector<8x1xf32>
    %136 = vector.broadcast %135 : vector<8x1xf32> to vector<8x128xf32>
    %137 = arith.mulf %132, %136 : vector<8x128xf32>
    %c1_60 = arith.constant 1 : index
    %c0_61 = arith.constant 0 : index
    %138 = vector.load %arg9[%c1_60, %c0_61] : memref<3x128xf32, #tpu.memory_space<vmem>>, vector<1x128xf32>
    %139 = vector.broadcast %138 : vector<1x128xf32> to vector<8x128xf32>
    %140 = arith.mulf %137, %139 : vector<8x128xf32>
    %c2_62 = arith.constant 2 : index
    %c0_63 = arith.constant 0 : index
    %141 = vector.load %arg9[%c2_62, %c0_63] : memref<3x128xf32, #tpu.memory_space<vmem>>, vector<1x128xf32>
    %142 = vector.broadcast %141 : vector<1x128xf32> to vector<8x128xf32>
    %143 = arith.addf %140, %142 : vector<8x128xf32>
    %cst_64 = arith.constant 0.000000e+00 : f32
    %144 = vector.broadcast %cst_64 : f32 to vector<8x128xf32>
    %145 = arith.cmpf oge, %143, %144 : vector<8x128xf32>
    %cst_65 = arith.constant 2.000000e-01 : f32
    %146 = vector.broadcast %cst_65 : f32 to vector<8x128xf32>
    %147 = arith.mulf %146, %143 : vector<8x128xf32>
    %148 = arith.select %145, %143, %147 : vector<8x128xi1>, vector<8x128xf32>
    %c0_66 = arith.constant 0 : index
    %c0_67 = arith.constant 0 : index
    %149 = vector.load %arg10[%c0_66, %c0_67] : memref<8x128xf32, #tpu.memory_space<vmem>>, vector<8x128xf32>
    tpu.vector_store %arg10[%c0_66, %c0_67], %148 {strides = array<i32>} : memref<8x128xf32, #tpu.memory_space<vmem>>, vector<8x128xf32>,
    return
  }
  func.func @transform_0(%arg0: i32) -> (i32, i32) {
    %c0_i32 = arith.constant 0 : i32
    %c0_i32_0 = arith.constant 0 : i32
    return %arg0, %c0_i32 : i32, i32
  }
  func.func @transform_1(%arg0: i32) -> (i32, i32) {
    %c0_i32 = arith.constant 0 : i32
    %c0_i32_0 = arith.constant 0 : i32
    %c0_i32_1 = arith.constant 0 : i32
    return %c0_i32, %c0_i32_0 : i32, i32
  }
  func.func @transform_2(%arg0: i32) -> (i32, i32) {
    %c0_i32 = arith.constant 0 : i32
    %c0_i32_0 = arith.constant 0 : i32
    %c0_i32_1 = arith.constant 0 : i32
    return %c0_i32, %c0_i32_0 : i32, i32
  }
  func.func @transform_3(%arg0: i32) -> (i32, i32) {
    %c0_i32 = arith.constant 0 : i32
    %c0_i32_0 = arith.constant 0 : i32
    %c0_i32_1 = arith.constant 0 : i32
    return %c0_i32, %c0_i32_0 : i32, i32
  }
  func.func @transform_4(%arg0: i32) -> (i32, i32) {
    %c0_i32 = arith.constant 0 : i32
    %c0_i32_0 = arith.constant 0 : i32
    %c0_i32_1 = arith.constant 0 : i32
    return %c0_i32, %c0_i32_0 : i32, i32
  }
  func.func @transform_5(%arg0: i32) -> (i32, i32) {
    %c0_i32 = arith.constant 0 : i32
    %c0_i32_0 = arith.constant 0 : i32
    %c0_i32_1 = arith.constant 0 : i32
    return %c0_i32, %c0_i32_0 : i32, i32
  }
  func.func @transform_6(%arg0: i32) -> (i32, i32) {
    %c0_i32 = arith.constant 0 : i32
    %c0_i32_0 = arith.constant 0 : i32
    %c0_i32_1 = arith.constant 0 : i32
    return %c0_i32, %c0_i32_0 : i32, i32
  }
  func.func @transform_7(%arg0: i32) -> (i32, i32) {
    %c0_i32 = arith.constant 0 : i32
    %c0_i32_0 = arith.constant 0 : i32
    %c0_i32_1 = arith.constant 0 : i32
    return %c0_i32, %c0_i32_0 : i32, i32
  }
  func.func @transform_8(%arg0: i32) -> (i32, i32) {
    %c0_i32 = arith.constant 0 : i32
    %c0_i32_0 = arith.constant 0 : i32
    %c0_i32_1 = arith.constant 0 : i32
    return %c0_i32, %c0_i32_0 : i32, i32
  }
  func.func @transform_9(%arg0: i32) -> (i32, i32) {
    %c0_i32 = arith.constant 0 : i32
    %c0_i32_0 = arith.constant 0 : i32
    return %arg0, %c0_i32 : i32, i32
  }
}

</mosaic_0001>

<bundles_post_ra>
// kernel: tpu_custom_call.1
= control target key start
LH: loop header
LB: loop body
LE: loop exit
PB: predicated region body
PF: predicated region fallthrough
CT: control target
= control target key end

     0   :  { %14 = vsyncpa [#allocation3], 0  ;;  %s1245_s0 = inlined_call_operand.hbm [shape: f32[8,128], index: 0, kind: input, shape index: {}]   ;;  %s1246_s1 = inlined_call_operand.hbm [shape: bf16[128,128], index: 1, kind: input, shape index: {}]   ;;  %s1247_s2 = inlined_call_operand.vmem [shape: f32[3,128], index: 2, kind: input, shape index: {}]   ;;  %s1248_s3 = inlined_call_operand.hbm [shape: bf16[128,128], index: 3, kind: input, shape index: {}]   ;;  %s1249_s4 = inlined_call_operand.vmem [shape: f32[3,128], index: 4, kind: input, shape index: {}]   ;;  %s1250_s5 = inlined_call_operand.hbm [shape: bf16[128,128], index: 5, kind: input, shape index: {}]   ;;  %s1251_s6 = inlined_call_operand.vmem [shape: f32[3,128], index: 6, kind: input, shape index: {}]   ;;  %s1252_s7 = inlined_call_operand.hbm [shape: bf16[128,128], index: 7, kind: input, shape index: {}]   ;;  %s1253_s8 = inlined_call_operand.vmem [shape: f32[3,128], index: 8, kind: input, shape index: {}]   ;;  %s1254_s9 = inlined_call_operand.hbm [shape: f32[8,128], index: 9, kind: output, shape index: {}]  }
   0x1   :  { %15 = vsyncpa [#allocation6], 0 }
   0x2   :  { %16 = vsyncpa [#allocation9], 0 }
   0x3   :  { %17 = vsyncpa [#allocation4], 0  ;;  %s1025_s30 = smov [#allocation5]   ;;  %s885_s13 = scalar_lea.hbm %s1246_s1, 1024 }
   0x4   :  { %s33_s10 = sshll.u32 %s1025_s30, 4  ;;  %p886_p0 = scmp.ne.s32.totalorder %s1246_s1, %s885_s13  ;;  %s34_s10 = int_to_ptr.vmem [resolvable:$true] %s33_s10 }
   0x5   :  { %p889_p1 = scmp.lt.u32.totalorder %s885_s13, %s1246_s1 }
   0x7   :  { %p891_p2 = pnand %p889_p1, %p886_p0 }
   0x9   :  { %894 = shalt.err (!%p891_p2)
}
   0xa   :  { %s895_s18 = scalar_lea.vmem %s34_s10, 1024  ;;  %p900_p4 = scmp.lt.s32.totalorder %s34_s10, %s34_s10 }
   0xb   :  { %p896_p3 = scmp.ne.s32.totalorder %s34_s10, %s895_s18  ;;  %p901_p5 = scmp.lt.s32.totalorder %s895_s18, %s895_s18 }
   0xd   :  { %p902_p6 = por %p901_p5, %p900_p4 }
   0xf   :  { %p903_p7 = pnand %p902_p6, %p896_p3 }
  0x11   :  { %906 = shalt.err (!%p903_p7)
}
  0x12   :  { %s1026_s19 = smov 64   ;;  %s1027_s20 = smov 4  }
  0x13   :  { %39 = dma.hbm_to_vmem [thread:$0]  %s1246_s1, 1024, %s34_s10, [#allocation6], %s1026_s19, %s1026_s19, %s1027_s20  }
  0x14   :  { %s1028_s23 = smov [#allocation8]   ;;  %s1029_s25 = smov [#allocation2]  }
  0x15   :  { %s61_s24 = sshll.u32 %s1028_s23, 4  ;;  %s24_s26 = sshll.u32 %s1029_s25, 4  ;;  %s62_s24 = int_to_ptr.vmem [resolvable:$true] %s61_s24  ;;  %s25_s26 = int_to_ptr.vmem [resolvable:$true] %s24_s26 }
  0x16   :  { %s907_s29 = scalar_lea.hbm %s1250_s5, 1024 }
  0x17   :  { %p908_p8 = scmp.ne.s32.totalorder %s1250_s5, %s907_s29  ;;  %p911_p9 = scmp.lt.u32.totalorder %s907_s29, %s1250_s5 }
  0x19   :  { %p913_p10 = pnand %p911_p9, %p908_p8 }
  0x1b   :  { %916 = shalt.err (!%p913_p10)
}
  0x1c   :  { %s917_s1 = scalar_lea.vmem %s62_s24, 1024  ;;  %p922_p12 = scmp.lt.s32.totalorder %s62_s24, %s62_s24 }
  0x1d   :  { %p918_p11 = scmp.ne.s32.totalorder %s62_s24, %s917_s1  ;;  %p923_p13 = scmp.lt.s32.totalorder %s917_s1, %s917_s1 }
  0x1f   :  { %p924_p0 = por %p923_p13, %p922_p12 }
  0x21   :  { %p925_p1 = pnand %p924_p0, %p918_p11 }
  0x23   :  { %928 = shalt.err (!%p925_p1)
}
  0x24   :  { %67 = dma.hbm_to_vmem [thread:$0]  %s1250_s5, 1024, %s62_s24, [#allocation9], %s1026_s19, %s1026_s19, %s1027_s20  }
  0x25   :  { %s929_s17 = scalar_lea.hbm %s1245_s0, 128 }
  0x26   :  { %p930_p2 = scmp.ne.s32.totalorder %s1245_s0, %s929_s17  ;;  %p933_p3 = scmp.lt.u32.totalorder %s929_s17, %s1245_s0 }
  0x28   :  { %p935_p4 = pnand %p933_p3, %p930_p2 }
  0x2a   :  { %938 = shalt.err (!%p935_p4)
}
  0x2b   :  { %s939_s25 = scalar_lea.vmem %s25_s26, 128  ;;  %p944_p6 = scmp.lt.s32.totalorder %s25_s26, %s25_s26 }
  0x2c   :  { %p940_p5 = scmp.ne.s32.totalorder %s25_s26, %s939_s25  ;;  %p945_p7 = scmp.lt.s32.totalorder %s939_s25, %s939_s25 }
  0x2e   :  { %p946_p8 = por %p945_p7, %p944_p6 }
  0x30   :  { %p947_p9 = pnand %p946_p8, %p940_p5 }
  0x32   :  { %950 = shalt.err (!%p947_p9)
}
  0x33   :  { %27 = dma.hbm_to_vmem [thread:$0]  %s1245_s0, 128, %s25_s26, [#allocation3]  }
  0x34   :  { %s1030_s27 = smov [#allocation7]   ;;  %s1031_s29 = smov [#allocation10]  }
  0x35   :  { %s47_s28 = sshll.u32 %s1030_s27, 4  ;;  %s75_s30 = sshll.u32 %s1031_s29, 4  ;;  %s48_s28 = int_to_ptr.vmem [resolvable:$true] %s47_s28  ;;  %s76_s30 = int_to_ptr.vmem [resolvable:$true] %s75_s30 }
  0x36   :  { %s951_s13 = scalar_lea.hbm %s1248_s3, 1024 }
  0x37   :  { %p952_p10 = scmp.ne.s32.totalorder %s1248_s3, %s951_s13  ;;  %p955_p11 = scmp.lt.u32.totalorder %s951_s13, %s1248_s3 }
  0x39   :  { %p957_p12 = pnand %p955_p11, %p952_p10 }
  0x3b   :  { %960 = shalt.err (!%p957_p12)
}
  0x3c   :  { %s961_s0 = scalar_lea.vmem %s48_s28, 1024  ;;  %p966_p0 = scmp.lt.s32.totalorder %s48_s28, %s48_s28 }
  0x3d   :  { %p962_p13 = scmp.ne.s32.totalorder %s48_s28, %s961_s0  ;;  %p967_p1 = scmp.lt.s32.totalorder %s961_s0, %s961_s0 }
  0x3f   :  { %p968_p2 = por %p967_p1, %p966_p0 }
  0x41   :  { %p969_p3 = pnand %p968_p2, %p962_p13 }
  0x43   :  { %972 = shalt.err (!%p969_p3)
}
  0x44   :  { %53 = dma.hbm_to_vmem [thread:$0]  %s1248_s3, 1024, %s48_s28, [#allocation6], %s1026_s19, %s1026_s19, %s1027_s20  }
  0x45   :  { %s973_s21 = scalar_lea.hbm %s1252_s7, 1024 }
  0x46   :  { %p974_p4 = scmp.ne.s32.totalorder %s1252_s7, %s973_s21  ;;  %p977_p5 = scmp.lt.u32.totalorder %s973_s21, %s1252_s7 }
  0x48   :  { %p979_p6 = pnand %p977_p5, %p974_p4 }
  0x4a   :  { %982 = shalt.err (!%p979_p6)
}
  0x4b   :  { %s983_s24 = scalar_lea.vmem %s76_s30, 1024  ;;  %p988_p8 = scmp.lt.s32.totalorder %s76_s30, %s76_s30 }
  0x4c   :  { %p984_p7 = scmp.ne.s32.totalorder %s76_s30, %s983_s24  ;;  %p989_p9 = scmp.lt.s32.totalorder %s983_s24, %s983_s24 }
  0x4e   :  { %p990_p10 = por %p989_p9, %p988_p8 }
  0x50   :  { %p991_p11 = pnand %p990_p10, %p984_p7 }
  0x52   :  { %994 = shalt.err (!%p991_p11)
}
  0x53   :  { %81 = dma.hbm_to_vmem [thread:$0]  %s1252_s7, 1024, %s76_s30, [#allocation9], %s1026_s19, %s1026_s19, %s1027_s20  }
  0x54   :  { %1017 = dma.done.wait [#allocation3], 128  }
  0x55   :  { %1018 = vsyncadd [#allocation3], 4294967168 }
  0x56   :  { %1019 = dma.done.wait [#allocation6], 2048  }
  0x57   :  { %1020 = vsyncadd [#allocation6], 4294965248 }
  0x58   :  { %1021 = dma.done.wait [#allocation9], 2048  }
  0x59   :  { %1022 = vsyncadd [#allocation9], 4294965248  ;;  %v1032_v0 = vmov 0.0   ;;  %vm1033_vm0 = vmmov 0   ;;  %v845_v1 = vld [vmem:[#allocation5] sm:$0xff]   ;;  %v846_v2 = vld [vmem:[#allocation5 + $0x8] sm:$0xff]  }
  0x5a   :  { %755 = vmatprep.subr.bf16.mxu0 %v1032_v0  ;;  %771 = vmatprep.mubr.msk.bf16.mxu0 %vm1033_vm0, %v1032_v0  ;;  %v847_v3 = vld [vmem:[#allocation5 + $0x10] sm:$0xff]   ;;  %v848_v4 = vld [vmem:[#allocation5 + $0x18] sm:$0xff]   ;;  %v849_v5 = vld [vmem:[#allocation5 + $0x20] sm:$0xff]   ;;  %s1034_s25 = smov [#allocation11]  }
  0x5b   :  { %775 = vmatprep.subr.bf16.mxu1 %v1032_v0  ;;  %791 = vmatprep.mubr.msk.bf16.mxu1 %vm1033_vm0, %v1032_v0  ;;  %v850_v6 = vld [vmem:[#allocation5 + $0x28] sm:$0xff]   ;;  %v851_v7 = vld [vmem:[#allocation5 + $0x30] sm:$0xff]   ;;  %v852_v8 = vld [vmem:[#allocation5 + $0x38] sm:$0xff]   ;;  %s664_s5 = sshll.u32 %s1034_s25, 4  ;;  %s665_s5 = int_to_ptr.vmem [resolvable:$true] %s664_s5 }
  0x5c   :  { %756 = vmatpush3.bf16.msra.mxu0 %v845_v1  ;;  %v100_v9 = vld [vmem:[#allocation2] sm:$0xff]  ;;  %v853_v18 = vld [vmem:[#allocation7] sm:$0xff]   ;;  %v854_v19 = vld [vmem:[#allocation7 + $0x8] sm:$0xff]   ;;  %s995_s24 = scalar_lea.vmem %s665_s5, 128  ;;  %p1000_p13 = scmp.lt.s32.totalorder %s665_s5, %s665_s5 }
  0x5d   :  { %757 = vmatprep.subr.bf16.mxu0 %v1032_v0  ;;  %v101_v10 = vpack.c.bf16 %v100_v9, %v100_v9  ;;  %v675_v11 = vld [vmem:[%s1247_s2] ss:$0 sm:$0xff]  ;;  %776 = vmatpush3.bf16.msra.mxu1 %v853_v18  ;;  %v855_v20 = vld [vmem:[#allocation7 + $0x10] sm:$0xff]   ;;  %v857_v22 = vld [vmem:[#allocation7 + $0x20] sm:$0xff]   ;;  %p996_p12 = scmp.ne.s32.totalorder %s665_s5, %s995_s24  ;;  %p1001_p0 = scmp.lt.s32.totalorder %s995_s24, %s995_s24 }
  0x5e   :  { %777 = vmatprep.subr.bf16.mxu1 %v1032_v0  ;;  %v856_v21 = vld [vmem:[#allocation7 + $0x18] sm:$0xff]   ;;  %v858_v23 = vld [vmem:[#allocation7 + $0x28] sm:$0xff]   ;;  %v859_v24 = vld [vmem:[#allocation7 + $0x30] sm:$0xff]  }
  0x5f   :  { %v860_v25 = vld [vmem:[#allocation7 + $0x38] sm:$0xff]   ;;  %v861_v51 = vld [vmem:[#allocation8] sm:$0xff]   ;;  %v862_v52 = vld [vmem:[#allocation8 + $0x8] sm:$0xff]   ;;  %p1002_p1 = por %p1001_p0, %p1000_p13 }
  0x60   :  { %758 = vmatpush3.bf16.msra.mxu0 %v846_v2  ;;  %v684_v36 = vld [vmem:[%s1247_s2 + $0x1] ss:$0 sm:$0xff]  ;;  %v685_v38 = vld [vmem:[%s1247_s2 + $0x2] ss:$0 sm:$0xff]  ;;  %v686_v44 = vld [vmem:[%s1249_s4] ss:$0 sm:$0xff] }
  0x61   :  { %759 = vmatprep.subr.bf16.mxu0 %v1032_v0  ;;  %778 = vmatpush3.bf16.msra.mxu1 %v854_v19  ;;  %v863_v53 = vld [vmem:[#allocation8 + $0x10] sm:$0xff]   ;;  %v864_v54 = vld [vmem:[#allocation8 + $0x18] sm:$0xff]   ;;  %v865_v55 = vld [vmem:[#allocation8 + $0x20] sm:$0xff]   ;;  %p1003_p2 = pnand %p1002_p1, %p996_p12 }
  0x62   :  { %779 = vmatprep.subr.bf16.mxu1 %v1032_v0  ;;  %v866_v56 = vld [vmem:[#allocation8 + $0x28] sm:$0xff]   ;;  %v867_v57 = vld [vmem:[#allocation8 + $0x30] sm:$0xff]   ;;  %v868_v58 = vld [vmem:[#allocation8 + $0x38] sm:$0xff]  }
  0x64   :  { %760 = vmatpush3.bf16.msra.mxu0 %v847_v3 }
  0x65   :  { %761 = vmatprep.subr.bf16.mxu0 %v1032_v0  ;;  %780 = vmatpush3.bf16.msra.mxu1 %v855_v20 }
  0x66   :  { %781 = vmatprep.subr.bf16.mxu1 %v1032_v0 }
  0x68   :  { %762 = vmatpush3.bf16.msra.mxu0 %v848_v4 }
  0x69   :  { %763 = vmatprep.subr.bf16.mxu0 %v1032_v0  ;;  %782 = vmatpush3.bf16.msra.mxu1 %v856_v21  ;;  %v869_v21 = vld [vmem:[#allocation10] sm:$0xff]  }
  0x6a   :  { %783 = vmatprep.subr.bf16.mxu1 %v1032_v0 }
  0x6c   :  { %764 = vmatpush3.bf16.msra.mxu0 %v849_v5 }
  0x6d   :  { %765 = vmatprep.subr.bf16.mxu0 %v1032_v0  ;;  %784 = vmatpush3.bf16.msra.mxu1 %v857_v22  ;;  %v870_v22 = vld [vmem:[#allocation10 + $0x8] sm:$0xff]  }
  0x6e   :  { %785 = vmatprep.subr.bf16.mxu1 %v1032_v0 }
  0x70   :  { %766 = vmatpush3.bf16.msra.mxu0 %v850_v6  ;;  %v695_v6 = vld [vmem:[%s1249_s4 + $0x1] ss:$0 sm:$0xff] }
  0x71   :  { %767 = vmatprep.subr.bf16.mxu0 %v1032_v0  ;;  %786 = vmatpush3.bf16.msra.mxu1 %v858_v23  ;;  %v871_v23 = vld [vmem:[#allocation10 + $0x10] sm:$0xff]  }
  0x72   :  { %787 = vmatprep.subr.bf16.mxu1 %v1032_v0 }
  0x74   :  { %768 = vmatpush3.bf16.msra.mxu0 %v851_v7 }
  0x75   :  { %769 = vmatprep.subr.bf16.mxu0 %v1032_v0  ;;  %788 = vmatpush3.bf16.msra.mxu1 %v859_v24  ;;  %v872_v24 = vld [vmem:[#allocation10 + $0x18] sm:$0xff]  }
  0x76   :  { %789 = vmatprep.subr.bf16.mxu1 %v1032_v0 }
  0x78   :  { %770 = vmatpush3.bf16.msra.mxu0 %v852_v8  ;;  %v696_v8 = vld [vmem:[%s1249_s4 + $0x2] ss:$0 sm:$0xff] }
  0x79   :  { %795 = vmatprep.subr.bf16.mxu0 %v1032_v0  ;;  %790 = vmatpush3.bf16.msra.mxu1 %v860_v25  ;;  %v873_v25 = vld [vmem:[#allocation10 + $0x20] sm:$0xff]  }
  0x7a   :  { %815 = vmatprep.subr.bf16.mxu1 %v1032_v0 }
  0x7b   :  { %772 = vmatmul.mubr.bf16.vlgmr.msra.gmra.mrb[0].mxu0 %v101_v10 }
  0x7c   :  { %811 = vmatprep.mubr.msk.bf16.mxu0 %vm1033_vm0, %v1032_v0  ;;  %796 = vmatpush3.bf16.msra.mxu0 %v861_v51 }
  0x7d   :  { %797 = vmatprep.subr.bf16.mxu0 %v1032_v0 }
  0x80   :  { %798 = vmatpush3.bf16.msra.mxu0 %v862_v52 }
  0x81   :  { %799 = vmatprep.subr.bf16.mxu0 %v1032_v0 }
  0x84   :  { %800 = vmatpush3.bf16.msra.mxu0 %v863_v53 }
  0x85   :  { %801 = vmatprep.subr.bf16.mxu0 %v1032_v0 }
  0x88   :  { %802 = vmatpush3.bf16.msra.mxu0 %v864_v54 }
  0x89   :  { %803 = vmatprep.subr.bf16.mxu0 %v1032_v0 }
  0x8c   :  { %804 = vmatpush3.bf16.msra.mxu0 %v865_v55 }
  0x8d   :  { %805 = vmatprep.subr.bf16.mxu0 %v1032_v0 }
  0x90   :  { %806 = vmatpush3.bf16.msra.mxu0 %v866_v56 }
  0x91   :  { %807 = vmatprep.subr.bf16.mxu0 %v1032_v0 }
  0x94   :  { %808 = vmatpush3.bf16.msra.mxu0 %v867_v57 }
  0x95   :  { %809 = vmatprep.subr.bf16.mxu0 %v1032_v0 }
  0x98   :  { %810 = vmatpush3.bf16.msra.mxu0 %v868_v58 }
 0x14e   :  { %v205_v12 = vpop.f32.mrb[0].mxu0 }
 0x14f   :  { %v206_v13 = vadd.f32 %v675_v11, %v205_v12  ;;  %v773_v14 = vpop.f32.mrb[1].mxu0 }
 0x150   :  { %v208_v15 = vpop.f32.mrb[2].mxu0  ;;  %v697_v14 = vld [vmem:[%s1251_s6] ss:$0 sm:$0xff] }
 0x151   :  { %211 = vadd.xlane.f32.xlu0 %v206_v13  ;;  %v774_v16 = vpop.f32.mrb[3].mxu0  ;;  %v213_v17 = vmul.f32 %v206_v13, %v206_v13 }
 0x155   :  { %214 = vadd.xlane.f32.xlu0 %v213_v17 }
 0x1de   :  { %v212_v26 = vpop.xlane.xlu0 %211 }
 0x1df   :  { %v216_v27 = vmul.f32 0.03125, %v212_v26  ;;  %v874_v26 = vld [vmem:[#allocation10 + $0x28] sm:$0xff]  }
 0x1e1   :  { %v218_v29 = vmul.f32 %v216_v27, %v216_v27  ;;  %v221_v34 = vsub.f32 %v206_v13, %v216_v27  ;;  %v875_v27 = vld [vmem:[#allocation10 + $0x30] sm:$0xff]  }
 0x1e2   :  { %v215_v28 = vpop.xlane.xlu0 %214 }
 0x1e3   :  { %v217_v30 = vmul.f32 0.03125, %v215_v28  ;;  %v876_v28 = vld [vmem:[#allocation10 + $0x38] sm:$0xff]  }
 0x1e5   :  { %v219_v31 = vsub.f32 %v217_v30, %v218_v29 }
 0x1e7   :  { %v220_v32 = vmax.f32 %v219_v31, 0.0 }
 0x1e9   :  { %v222_v33 = vadd.f32 1e-05, %v220_v32 }
 0x1eb   :  { %877 = vrsqrt.f32 %v222_v33 }
 0x1f5   :  { %v878_v35 = vpop.eup %877 }
 0x1f6   :  { %v224_v37 = vmul.f32 %v878_v35, %v221_v34 }
 0x1f8   :  { %v230_v39 = vmul.f32 %v684_v36, %v224_v37 }
 0x1fa   :  { %v236_v40 = vadd.f32 %v685_v38, %v230_v39  ;;  %v706_v39 = vld [vmem:[%s1251_s6 + $0x1] ss:$0 sm:$0xff] }
 0x1fc   :  { %vm237_vm1 = vcmp.ge.f32.partialorder %v236_v40, 0.0  ;;  %v238_v41 = vmul.f32 0.2, %v236_v40 }
 0x1fe   :  { %v239_v42 = vsel %vm237_vm1, %v236_v40, %v238_v41 }
 0x1ff   :  { %v240_v43 = vpack.c.bf16 %v239_v42, %v239_v42 }
 0x201   :  { %792 = vmatmul.mubr.bf16.vlgmr.msra.gmra.mrb[0].mxu1 %v240_v43 }
 0x202   :  { %831 = vmatprep.mubr.msk.bf16.mxu1 %vm1033_vm0, %v1032_v0  ;;  %816 = vmatpush3.bf16.msra.mxu1 %v869_v21 }
 0x203   :  { %817 = vmatprep.subr.bf16.mxu1 %v1032_v0 }
 0x206   :  { %818 = vmatpush3.bf16.msra.mxu1 %v870_v22 }
 0x207   :  { %819 = vmatprep.subr.bf16.mxu1 %v1032_v0 }
 0x20a   :  { %820 = vmatpush3.bf16.msra.mxu1 %v871_v23 }
 0x20b   :  { %821 = vmatprep.subr.bf16.mxu1 %v1032_v0 }
 0x20e   :  { %822 = vmatpush3.bf16.msra.mxu1 %v872_v24 }
 0x20f   :  { %823 = vmatprep.subr.bf16.mxu1 %v1032_v0 }
 0x212   :  { %824 = vmatpush3.bf16.msra.mxu1 %v873_v25 }
 0x213   :  { %825 = vmatprep.subr.bf16.mxu1 %v1032_v0 }
 0x216   :  { %826 = vmatpush3.bf16.msra.mxu1 %v874_v26 }
 0x217   :  { %827 = vmatprep.subr.bf16.mxu1 %v1032_v0 }
 0x21a   :  { %828 = vmatpush3.bf16.msra.mxu1 %v875_v27 }
 0x21b   :  { %829 = vmatprep.subr.bf16.mxu1 %v1032_v0  ;;  %v707_v0 = vld [vmem:[%s1251_s6 + $0x2] ss:$0 sm:$0xff] }
 0x21e   :  { %830 = vmatpush3.bf16.msra.mxu1 %v876_v28 }
 0x2d4   :  { %v344_v45 = vpop.f32.mrb[0].mxu1 }
 0x2d5   :  { %v345_v46 = vadd.f32 %v686_v44, %v344_v45  ;;  %v793_v47 = vpop.f32.mrb[1].mxu1 }
 0x2d6   :  { %v347_v48 = vpop.f32.mrb[2].mxu1 }
 0x2d7   :  { %350 = vadd.xlane.f32.xlu1 %v345_v46  ;;  %v794_v49 = vpop.f32.mrb[3].mxu1  ;;  %v352_v50 = vmul.f32 %v345_v46, %v345_v46 }
 0x2db   :  { %353 = vadd.xlane.f32.xlu1 %v352_v50 }
 0x364   :  { %v351_v59 = vpop.xlane.xlu1 %350 }
 0x365   :  { %v355_v60 = vmul.f32 0.03125, %v351_v59 }
 0x367   :  { %v357_v62 = vmul.f32 %v355_v60, %v355_v60  ;;  %v360_v4 = vsub.f32 %v345_v46, %v355_v60  ;;  %v708_v46 = vld [vmem:[%s1253_s8] ss:$0 sm:$0xff] }
 0x368   :  { %v354_v61 = vpop.xlane.xlu1 %353 }
 0x369   :  { %v356_v63 = vmul.f32 0.03125, %v354_v61 }
 0x36b   :  { %v358_v1 = vsub.f32 %v356_v63, %v357_v62  ;;  %v717_v63 = vld [vmem:[%s1253_s8 + $0x1] ss:$0 sm:$0xff] }
 0x36d   :  { %v359_v2 = vmax.f32 %v358_v1, 0.0 }
 0x36f   :  { %v361_v3 = vadd.f32 1e-05, %v359_v2  ;;  %v718_v2 = vld [vmem:[%s1253_s8 + $0x2] ss:$0 sm:$0xff] }
 0x371   :  { %879 = vrsqrt.f32 %v361_v3 }
 0x37b   :  { %v880_v5 = vpop.eup %879 }
 0x37c   :  { %v363_v7 = vmul.f32 %v880_v5, %v360_v4 }
 0x37e   :  { %v369_v9 = vmul.f32 %v695_v6, %v363_v7 }
 0x380   :  { %v375_v10 = vadd.f32 %v696_v8, %v369_v9 }
 0x382   :  { %vm376_vm2 = vcmp.ge.f32.partialorder %v375_v10, 0.0  ;;  %v377_v11 = vmul.f32 0.2, %v375_v10 }
 0x384   :  { %v378_v12 = vsel %vm376_vm2, %v375_v10, %v377_v11 }
 0x385   :  { %v379_v13 = vpack.c.bf16 %v378_v12, %v378_v12 }
 0x387   :  { %812 = vmatmul.mubr.bf16.vlgmr.msra.gmra.mrb[4].mxu0 %v379_v13 }
 0x45a   :  { %v483_v15 = vpop.f32.mrb[4].mxu0 }
 0x45b   :  { %v484_v16 = vadd.f32 %v697_v14, %v483_v15  ;;  %v813_v17 = vpop.f32.mrb[5].mxu0 }
 0x45c   :  { %v486_v18 = vpop.f32.mrb[6].mxu0 }
 0x45d   :  { %489 = vadd.xlane.f32.xlu0 %v484_v16  ;;  %v814_v19 = vpop.f32.mrb[7].mxu0  ;;  %v491_v20 = vmul.f32 %v484_v16, %v484_v16 }
 0x45f   :  { %492 = vadd.xlane.f32.xlu1 %v491_v20 }
 0x4ea   :  { %v490_v29 = vpop.xlane.xlu0 %489 }
 0x4eb   :  { %v494_v30 = vmul.f32 0.03125, %v490_v29 }
 0x4ec   :  { %v493_v31 = vpop.xlane.xlu1 %492 }
 0x4ed   :  { %v496_v32 = vmul.f32 %v494_v30, %v494_v30  ;;  %v495_v33 = vmul.f32 0.03125, %v493_v31  ;;  %v499_v37 = vsub.f32 %v484_v16, %v494_v30 }
 0x4ef   :  { %v497_v34 = vsub.f32 %v495_v33, %v496_v32 }
 0x4f1   :  { %v498_v35 = vmax.f32 %v497_v34, 0.0 }
 0x4f3   :  { %v500_v36 = vadd.f32 1e-05, %v498_v35 }
 0x4f5   :  { %881 = vrsqrt.f32 %v500_v36 }
 0x4ff   :  { %v882_v38 = vpop.eup %881 }
 0x500   :  { %v502_v40 = vmul.f32 %v882_v38, %v499_v37 }
 0x502   :  { %v508_v41 = vmul.f32 %v706_v39, %v502_v40 }
 0x504   :  { %v514_v42 = vadd.f32 %v707_v0, %v508_v41 }
 0x506   :  { %vm515_vm3 = vcmp.ge.f32.partialorder %v514_v42, 0.0  ;;  %v516_v43 = vmul.f32 0.2, %v514_v42 }
 0x508   :  { %v517_v44 = vsel %vm515_vm3, %v514_v42, %v516_v43 }
 0x509   :  { %v518_v45 = vpack.c.bf16 %v517_v44, %v517_v44 }
 0x50b   :  { %832 = vmatmul.mubr.bf16.vlgmr.msra.gmra.mrb[4].mxu1 %v518_v45 }
 0x5de   :  { %v622_v47 = vpop.f32.mrb[4].mxu1 }
 0x5df   :  { %v623_v48 = vadd.f32 %v708_v46, %v622_v47  ;;  %v833_v49 = vpop.f32.mrb[5].mxu1 }
 0x5e0   :  { %v625_v50 = vpop.f32.mrb[6].mxu1 }
 0x5e1   :  { %628 = vadd.xlane.f32.xlu0 %v623_v48  ;;  %v834_v51 = vpop.f32.mrb[7].mxu1  ;;  %v630_v52 = vmul.f32 %v623_v48, %v623_v48 }
 0x5e3   :  { %631 = vadd.xlane.f32.xlu1 %v630_v52 }
 0x66e   :  { %v629_v53 = vpop.xlane.xlu0 %628 }
 0x66f   :  { %v633_v54 = vmul.f32 0.125, %v629_v53 }
 0x670   :  { %v632_v55 = vpop.xlane.xlu1 %631 }
 0x671   :  { %v635_v56 = vmul.f32 %v633_v54, %v633_v54  ;;  %v634_v57 = vmul.f32 0.125, %v632_v55  ;;  %v638_v61 = vsub.f32 %v623_v48, %v633_v54 }
 0x673   :  { %v636_v58 = vsub.f32 %v634_v57, %v635_v56 }
 0x675   :  { %v637_v59 = vmax.f32 %v636_v58, 0.0 }
 0x677   :  { %v639_v60 = vadd.f32 1e-05, %v637_v59 }
 0x679   :  { %883 = vrsqrt.f32 %v639_v60 }
 0x683   :  { %v884_v62 = vpop.eup %883 }
 0x684   :  { %v641_v1 = vmul.f32 %v884_v62, %v638_v61 }
 0x686   :  { %v647_v3 = vmul.f32 %v717_v63, %v641_v1 }
 0x688   :  { %v653_v4 = vadd.f32 %v718_v2, %v647_v3 }
 0x68a   :  { %vm654_vm4 = vcmp.ge.f32.partialorder %v653_v4, 0.0  ;;  %v655_v5 = vmul.f32 0.2, %v653_v4 }
 0x68c   :  { %v656_v6 = vsel %vm654_vm4, %v653_v4, %v655_v5 }
 0x68d   :  { %657 = vst [vmem:[#allocation11] sm:$0xff] %v656_v6 }
 0x68e   :  { %1006 = shalt.err (!%p1003_p2)
}
 0x68f   :  { %s1007_s8 = scalar_lea.hbm %s1254_s9, 128 }
 0x690   :  { %p1008_p3 = scmp.ne.s32.totalorder %s1254_s9, %s1007_s8  ;;  %p1011_p4 = scmp.lt.u32.totalorder %s1007_s8, %s1254_s9 }
 0x692   :  { %p1013_p5 = pnand %p1011_p4, %p1008_p3 }
 0x694   :  { %1016 = shalt.err (!%p1013_p5)
}
 0x695   :  { %667 = dma.vmem_to_hbm [thread:$0]  %s665_s5, 128, %s1254_s9, [#allocation4]  }
 0x696   :  { %1023 = dma.done.wait [#allocation4], 128  }
 0x697   :  { %1024 = vsyncadd [#allocation4], 4294967168 }
 0x698   :  { %671 = vsyncpa [#allocation3], 1 }
 0x699   :  { %672 = vsyncpa [#allocation6], 1 }
 0x69a   :  { %673 = vsyncpa [#allocation9], 1 }
 0x69b   :  { %674 = vsyncpa [#allocation4], 1 }

// kernel: tpu_custom_call.1
= control target key start
LH: loop header
LB: loop body
LE: loop exit
PB: predicated region body
PF: predicated region fallthrough
CT: control target
= control target key end

     0   :  { %14 = vsyncpa [#allocation3], 0  ;;  %s1245_s0 = inlined_call_operand.hbm [shape: f32[8,128], index: 0, kind: input, shape index: {}]   ;;  %s1246_s1 = inlined_call_operand.hbm [shape: bf16[128,128], index: 1, kind: input, shape index: {}]   ;;  %s1247_s2 = inlined_call_operand.vmem [shape: f32[3,128], index: 2, kind: input, shape index: {}]   ;;  %s1248_s3 = inlined_call_operand.hbm [shape: bf16[128,128], index: 3, kind: input, shape index: {}]   ;;  %s1249_s4 = inlined_call_operand.vmem [shape: f32[3,128], index: 4, kind: input, shape index: {}]   ;;  %s1250_s5 = inlined_call_operand.hbm [shape: bf16[128,128], index: 5, kind: input, shape index: {}]   ;;  %s1251_s6 = inlined_call_operand.vmem [shape: f32[3,128], index: 6, kind: input, shape index: {}]   ;;  %s1252_s7 = inlined_call_operand.hbm [shape: bf16[128,128], index: 7, kind: input, shape index: {}]   ;;  %s1253_s8 = inlined_call_operand.vmem [shape: f32[3,128], index: 8, kind: input, shape index: {}]   ;;  %s1254_s9 = inlined_call_operand.hbm [shape: f32[8,128], index: 9, kind: output, shape index: {}]  }
   0x1   :  { %15 = vsyncpa [#allocation6], 0 }
   0x2   :  { %16 = vsyncpa [#allocation9], 0 }
   0x3   :  { %17 = vsyncpa [#allocation4], 0  ;;  %s1025_s30 = smov [#allocation5]   ;;  %s885_s13 = scalar_lea.hbm %s1246_s1, 1024 }
   0x4   :  { %s33_s10 = sshll.u32 %s1025_s30, 4  ;;  %p886_p0 = scmp.ne.s32.totalorder %s1246_s1, %s885_s13  ;;  %s34_s10 = int_to_ptr.vmem [resolvable:$true] %s33_s10 }
   0x5   :  { %p889_p1 = scmp.lt.u32.totalorder %s885_s13, %s1246_s1 }
   0x7   :  { %p891_p2 = pnand %p889_p1, %p886_p0 }
   0x9   :  { %894 = shalt.err (!%p891_p2)
}
   0xa   :  { %s895_s18 = scalar_lea.vmem %s34_s10, 1024  ;;  %p900_p4 = scmp.lt.s32.totalorder %s34_s10, %s34_s10 }
   0xb   :  { %p896_p3 = scmp.ne.s32.totalorder %s34_s10, %s895_s18  ;;  %p901_p5 = scmp.lt.s32.totalorder %s895_s18, %s895_s18 }
   0xd   :  { %p902_p6 = por %p901_p5, %p900_p4 }
   0xf   :  { %p903_p7 = pnand %p902_p6, %p896_p3 }
  0x11   :  { %906 = shalt.err (!%p903_p7)
}
  0x12   :  { %s1026_s19 = smov 64   ;;  %s1027_s20 = smov 4  }
  0x13   :  { %39 = dma.hbm_to_vmem [thread:$0]  %s1246_s1, 1024, %s34_s10, [#allocation6], %s1026_s19, %s1026_s19, %s1027_s20  }
  0x14   :  { %s1028_s23 = smov [#allocation8]   ;;  %s1029_s25 = smov [#allocation2]  }
  0x15   :  { %s61_s24 = sshll.u32 %s1028_s23, 4  ;;  %s24_s26 = sshll.u32 %s1029_s25, 4  ;;  %s62_s24 = int_to_ptr.vmem [resolvable:$true] %s61_s24  ;;  %s25_s26 = int_to_ptr.vmem [resolvable:$true] %s24_s26 }
  0x16   :  { %s907_s29 = scalar_lea.hbm %s1250_s5, 1024 }
  0x17   :  { %p908_p8 = scmp.ne.s32.totalorder %s1250_s5, %s907_s29  ;;  %p911_p9 = scmp.lt.u32.totalorder %s907_s29, %s1250_s5 }
  0x19   :  { %p913_p10 = pnand %p911_p9, %p908_p8 }
  0x1b   :  { %916 = shalt.err (!%p913_p10)
}
  0x1c   :  { %s917_s1 = scalar_lea.vmem %s62_s24, 1024  ;;  %p922_p12 = scmp.lt.s32.totalorder %s62_s24, %s62_s24 }
  0x1d   :  { %p918_p11 = scmp.ne.s32.totalorder %s62_s24, %s917_s1  ;;  %p923_p13 = scmp.lt.s32.totalorder %s917_s1, %s917_s1 }
  0x1f   :  { %p924_p0 = por %p923_p13, %p922_p12 }
  0x21   :  { %p925_p1 = pnand %p924_p0, %p918_p11 }
  0x23   :  { %928 = shalt.err (!%p925_p1)
}
  0x24   :  { %67 = dma.hbm_to_vmem [thread:$0]  %s1250_s5, 1024, %s62_s24, [#allocation9], %s1026_s19, %s1026_s19, %s1027_s20  }
  0x25   :  { %s929_s17 = scalar_lea.hbm %s1245_s0, 128 }
  0x26   :  { %p930_p2 = scmp.ne.s32.totalorder %s1245_s0, %s929_s17  ;;  %p933_p3 = scmp.lt.u32.totalorder %s929_s17, %s1245_s0 }
  0x28   :  { %p935_p4 = pnand %p933_p3, %p930_p2 }
  0x2a   :  { %938 = shalt.err (!%p935_p4)
}
  0x2b   :  { %s939_s25 = scalar_lea.vmem %s25_s26, 128  ;;  %p944_p6 = scmp.lt.s32.totalorder %s25_s26, %s25_s26 }
  0x2c   :  { %p940_p5 = scmp.ne.s32.totalorder %s25_s26, %s939_s25  ;;  %p945_p7 = scmp.lt.s32.totalorder %s939_s25, %s939_s25 }
  0x2e   :  { %p946_p8 = por %p945_p7, %p944_p6 }
  0x30   :  { %p947_p9 = pnand %p946_p8, %p940_p5 }
  0x32   :  { %950 = shalt.err (!%p947_p9)
}
  0x33   :  { %27 = dma.hbm_to_vmem [thread:$0]  %s1245_s0, 128, %s25_s26, [#allocation3]  }
  0x34   :  { %s1030_s27 = smov [#allocation7]   ;;  %s1031_s29 = smov [#allocation10]  }
  0x35   :  { %s47_s28 = sshll.u32 %s1030_s27, 4  ;;  %s75_s30 = sshll.u32 %s1031_s29, 4  ;;  %s48_s28 = int_to_ptr.vmem [resolvable:$true] %s47_s28  ;;  %s76_s30 = int_to_ptr.vmem [resolvable:$true] %s75_s30 }
  0x36   :  { %s951_s13 = scalar_lea.hbm %s1248_s3, 1024 }
  0x37   :  { %p952_p10 = scmp.ne.s32.totalorder %s1248_s3, %s951_s13  ;;  %p955_p11 = scmp.lt.u32.totalorder %s951_s13, %s1248_s3 }
  0x39   :  { %p957_p12 = pnand %p955_p11, %p952_p10 }
  0x3b   :  { %960 = shalt.err (!%p957_p12)
}
  0x3c   :  { %s961_s0 = scalar_lea.vmem %s48_s28, 1024  ;;  %p966_p0 = scmp.lt.s32.totalorder %s48_s28, %s48_s28 }
  0x3d   :  { %p962_p13 = scmp.ne.s32.totalorder %s48_s28, %s961_s0  ;;  %p967_p1 = scmp.lt.s32.totalorder %s961_s0, %s961_s0 }
  0x3f   :  { %p968_p2 = por %p967_p1, %p966_p0 }
  0x41   :  { %p969_p3 = pnand %p968_p2, %p962_p13 }
  0x43   :  { %972 = shalt.err (!%p969_p3)
}
  0x44   :  { %53 = dma.hbm_to_vmem [thread:$0]  %s1248_s3, 1024, %s48_s28, [#allocation6], %s1026_s19, %s1026_s19, %s1027_s20  }
  0x45   :  { %s973_s21 = scalar_lea.hbm %s1252_s7, 1024 }
  0x46   :  { %p974_p4 = scmp.ne.s32.totalorder %s1252_s7, %s973_s21  ;;  %p977_p5 = scmp.lt.u32.totalorder %s973_s21, %s1252_s7 }
  0x48   :  { %p979_p6 = pnand %p977_p5, %p974_p4 }
  0x4a   :  { %982 = shalt.err (!%p979_p6)
}
  0x4b   :  { %s983_s24 = scalar_lea.vmem %s76_s30, 1024  ;;  %p988_p8 = scmp.lt.s32.totalorder %s76_s30, %s76_s30 }
  0x4c   :  { %p984_p7 = scmp.ne.s32.totalorder %s76_s30, %s983_s24  ;;  %p989_p9 = scmp.lt.s32.totalorder %s983_s24, %s983_s24 }
  0x4e   :  { %p990_p10 = por %p989_p9, %p988_p8 }
  0x50   :  { %p991_p11 = pnand %p990_p10, %p984_p7 }
  0x52   :  { %994 = shalt.err (!%p991_p11)
}
  0x53   :  { %81 = dma.hbm_to_vmem [thread:$0]  %s1252_s7, 1024, %s76_s30, [#allocation9], %s1026_s19, %s1026_s19, %s1027_s20  }
  0x54   :  { %1017 = dma.done.wait [#allocation3], 128  }
  0x55   :  { %1018 = vsyncadd [#allocation3], 4294967168 }
  0x56   :  { %1019 = dma.done.wait [#allocation6], 2048  }
  0x57   :  { %1020 = vsyncadd [#allocation6], 4294965248 }
  0x58   :  { %1021 = dma.done.wait [#allocation9], 2048  }
  0x59   :  { %1022 = vsyncadd [#allocation9], 4294965248  ;;  %v1032_v0 = vmov 0.0   ;;  %vm1033_vm0 = vmmov 0   ;;  %v845_v1 = vld [vmem:[#allocation5] sm:$0xff]   ;;  %v846_v2 = vld [vmem:[#allocation5 + $0x8] sm:$0xff]  }
  0x5a   :  { %755 = vmatprep.subr.bf16.mxu0 %v1032_v0  ;;  %771 = vmatprep.mubr.msk.bf16.mxu0 %vm1033_vm0, %v1032_v0  ;;  %v847_v3 = vld [vmem:[#allocation5 + $0x10] sm:$0xff]   ;;  %v848_v4 = vld [vmem:[#allocation5 + $0x18] sm:$0xff]   ;;  %v849_v5 = vld [vmem:[#allocation5 + $0x20] sm:$0xff]   ;;  %s1034_s25 = smov [#allocation11]  }
  0x5b   :  { %775 = vmatprep.subr.bf16.mxu1 %v1032_v0  ;;  %791 = vmatprep.mubr.msk.bf16.mxu1 %vm1033_vm0, %v1032_v0  ;;  %v850_v6 = vld [vmem:[#allocation5 + $0x28] sm:$0xff]   ;;  %v851_v7 = vld [vmem:[#allocation5 + $0x30] sm:$0xff]   ;;  %v852_v8 = vld [vmem:[#allocation5 + $0x38] sm:$0xff]   ;;  %s664_s5 = sshll.u32 %s1034_s25, 4  ;;  %s665_s5 = int_to_ptr.vmem [resolvable:$true] %s664_s5 }
  0x5c   :  { %756 = vmatpush3.bf16.msra.mxu0 %v845_v1  ;;  %v100_v9 = vld [vmem:[#allocation2] sm:$0xff]  ;;  %v853_v18 = vld [vmem:[#allocation7] sm:$0xff]   ;;  %v854_v19 = vld [vmem:[#allocation7 + $0x8] sm:$0xff]   ;;  %s995_s24 = scalar_lea.vmem %s665_s5, 128  ;;  %p1000_p13 = scmp.lt.s32.totalorder %s665_s5, %s665_s5 }
  0x5d   :  { %757 = vmatprep.subr.bf16.mxu0 %v1032_v0  ;;  %v101_v10 = vpack.c.bf16 %v100_v9, %v100_v9  ;;  %v675_v11 = vld [vmem:[%s1247_s2] ss:$0 sm:$0xff]  ;;  %776 = vmatpush3.bf16.msra.mxu1 %v853_v18  ;;  %v855_v20 = vld [vmem:[#allocation7 + $0x10] sm:$0xff]   ;;  %v857_v22 = vld [vmem:[#allocation7 + $0x20] sm:$0xff]   ;;  %p996_p12 = scmp.ne.s32.totalorder %s665_s5, %s995_s24  ;;  %p1001_p0 = scmp.lt.s32.totalorder %s995_s24, %s995_s24 }
  0x5e   :  { %777 = vmatprep.subr.bf16.mxu1 %v1032_v0  ;;  %v856_v21 = vld [vmem:[#allocation7 + $0x18] sm:$0xff]   ;;  %v858_v23 = vld [vmem:[#allocation7 + $0x28] sm:$0xff]   ;;  %v859_v24 = vld [vmem:[#allocation7 + $0x30] sm:$0xff]  }
  0x5f   :  { %v860_v25 = vld [vmem:[#allocation7 + $0x38] sm:$0xff]   ;;  %v861_v51 = vld [vmem:[#allocation8] sm:$0xff]   ;;  %v862_v52 = vld [vmem:[#allocation8 + $0x8] sm:$0xff]   ;;  %p1002_p1 = por %p1001_p0, %p1000_p13 }
  0x60   :  { %758 = vmatpush3.bf16.msra.mxu0 %v846_v2  ;;  %v684_v36 = vld [vmem:[%s1247_s2 + $0x1] ss:$0 sm:$0xff]  ;;  %v685_v38 = vld [vmem:[%s1247_s2 + $0x2] ss:$0 sm:$0xff]  ;;  %v686_v44 = vld [vmem:[%s1249_s4] ss:$0 sm:$0xff] }
  0x61   :  { %759 = vmatprep.subr.bf16.mxu0 %v1032_v0  ;;  %778 = vmatpush3.bf16.msra.mxu1 %v854_v19  ;;  %v863_v53 = vld [vmem:[#allocation8 + $0x10] sm:$0xff]   ;;  %v864_v54 = vld [vmem:[#allocation8 + $0x18] sm:$0xff]   ;;  %v865_v55 = vld [vmem:[#allocation8 + $0x20] sm:$0xff]   ;;  %p1003_p2 = pnand %p1002_p1, %p996_p12 }
  0x62   :  { %779 = vmatprep.subr.bf16.mxu1 %v1032_v0  ;;  %v866_v56 = vld [vmem:[#allocation8 + $0x28] sm:$0xff]   ;;  %v867_v57 = vld [vmem:[#allocation8 + $0x30] sm:$0xff]   ;;  %v868_v58 = vld [vmem:[#allocation8 + $0x38] sm:$0xff]  }
  0x64   :  { %760 = vmatpush3.bf16.msra.mxu0 %v847_v3 }
  0x65   :  { %761 = vmatprep.subr.bf16.mxu0 %v1032_v0  ;;  %780 = vmatpush3.bf16.msra.mxu1 %v855_v20 }
  0x66   :  { %781 = vmatprep.subr.bf16.mxu1 %v1032_v0 }
  0x68   :  { %762 = vmatpush3.bf16.msra.mxu0 %v848_v4 }
  0x69   :  { %763 = vmatprep.subr.bf16.mxu0 %v1032_v0  ;;  %782 = vmatpush3.bf16.msra.mxu1 %v856_v21  ;;  %v869_v21 = vld [vmem:[#allocation10] sm:$0xff]  }
  0x6a   :  { %783 = vmatprep.subr.bf16.mxu1 %v1032_v0 }
  0x6c   :  { %764 = vmatpush3.bf16.msra.mxu0 %v849_v5 }
  0x6d   :  { %765 = vmatprep.subr.bf16.mxu0 %v1032_v0  ;;  %784 = vmatpush3.bf16.msra.mxu1 %v857_v22  ;;  %v870_v22 = vld [vmem:[#allocation10 + $0x8] sm:$0xff]  }
  0x6e   :  { %785 = vmatprep.subr.bf16.mxu1 %v1032_v0 }
  0x70   :  { %766 = vmatpush3.bf16.msra.mxu0 %v850_v6  ;;  %v695_v6 = vld [vmem:[%s1249_s4 + $0x1] ss:$0 sm:$0xff] }
  0x71   :  { %767 = vmatprep.subr.bf16.mxu0 %v1032_v0  ;;  %786 = vmatpush3.bf16.msra.mxu1 %v858_v23  ;;  %v871_v23 = vld [vmem:[#allocation10 + $0x10] sm:$0xff]  }
  0x72   :  { %787 = vmatprep.subr.bf16.mxu1 %v1032_v0 }
  0x74   :  { %768 = vmatpush3.bf16.msra.mxu0 %v851_v7 }
  0x75   :  { %769 = vmatprep.subr.bf16.mxu0 %v1032_v0  ;;  %788 = vmatpush3.bf16.msra.mxu1 %v859_v24  ;;  %v872_v24 = vld [vmem:[#allocation10 + $0x18] sm:$0xff]  }
  0x76   :  { %789 = vmatprep.subr.bf16.mxu1 %v1032_v0 }
  0x78   :  { %770 = vmatpush3.bf16.msra.mxu0 %v852_v8  ;;  %v696_v8 = vld [vmem:[%s1249_s4 + $0x2] ss:$0 sm:$0xff] }
  0x79   :  { %795 = vmatprep.subr.bf16.mxu0 %v1032_v0  ;;  %790 = vmatpush3.bf16.msra.mxu1 %v860_v25  ;;  %v873_v25 = vld [vmem:[#allocation10 + $0x20] sm:$0xff]  }
  0x7a   :  { %815 = vmatprep.subr.bf16.mxu1 %v1032_v0 }
  0x7b   :  { %772 = vmatmul.mubr.bf16.vlgmr.msra.gmra.mrb[0].mxu0 %v101_v10 }
  0x7c   :  { %811 = vmatprep.mubr.msk.bf16.mxu0 %vm1033_vm0, %v1032_v0  ;;  %796 = vmatpush3.bf16.msra.mxu0 %v861_v51 }
  0x7d   :  { %797 = vmatprep.subr.bf16.mxu0 %v1032_v0 }
  0x80   :  { %798 = vmatpush3.bf16.msra.mxu0 %v862_v52 }
  0x81   :  { %799 = vmatprep.subr.bf16.mxu0 %v1032_v0 }
  0x84   :  { %800 = vmatpush3.bf16.msra.mxu0 %v863_v53 }
  0x85   :  { %801 = vmatprep.subr.bf16.mxu0 %v1032_v0 }
  0x88   :  { %802 = vmatpush3.bf16.msra.mxu0 %v864_v54 }
  0x89   :  { %803 = vmatprep.subr.bf16.mxu0 %v1032_v0 }
  0x8c   :  { %804 = vmatpush3.bf16.msra.mxu0 %v865_v55 }
  0x8d   :  { %805 = vmatprep.subr.bf16.mxu0 %v1032_v0 }
  0x90   :  { %806 = vmatpush3.bf16.msra.mxu0 %v866_v56 }
  0x91   :  { %807 = vmatprep.subr.bf16.mxu0 %v1032_v0 }
  0x94   :  { %808 = vmatpush3.bf16.msra.mxu0 %v867_v57 }
  0x95   :  { %809 = vmatprep.subr.bf16.mxu0 %v1032_v0 }
  0x98   :  { %810 = vmatpush3.bf16.msra.mxu0 %v868_v58 }
 0x14e   :  { %v205_v12 = vpop.f32.mrb[0].mxu0 }
 0x14f   :  { %v206_v13 = vadd.f32 %v675_v11, %v205_v12  ;;  %v773_v14 = vpop.f32.mrb[1].mxu0 }
 0x150   :  { %v208_v15 = vpop.f32.mrb[2].mxu0  ;;  %v697_v14 = vld [vmem:[%s1251_s6] ss:$0 sm:$0xff] }
 0x151   :  { %211 = vadd.xlane.f32.xlu0 %v206_v13  ;;  %v774_v16 = vpop.f32.mrb[3].mxu0  ;;  %v213_v17 = vmul.f32 %v206_v13, %v206_v13 }
 0x155   :  { %214 = vadd.xlane.f32.xlu0 %v213_v17 }
 0x1de   :  { %v212_v26 = vpop.xlane.xlu0 %211 }
 0x1df   :  { %v216_v27 = vmul.f32 0.03125, %v212_v26  ;;  %v874_v26 = vld [vmem:[#allocation10 + $0x28] sm:$0xff]  }
 0x1e1   :  { %v218_v29 = vmul.f32 %v216_v27, %v216_v27  ;;  %v221_v34 = vsub.f32 %v206_v13, %v216_v27  ;;  %v875_v27 = vld [vmem:[#allocation10 + $0x30] sm:$0xff]  }
 0x1e2   :  { %v215_v28 = vpop.xlane.xlu0 %214 }
 0x1e3   :  { %v217_v30 = vmul.f32 0.03125, %v215_v28  ;;  %v876_v28 = vld [vmem:[#allocation10 + $0x38] sm:$0xff]  }
 0x1e5   :  { %v219_v31 = vsub.f32 %v217_v30, %v218_v29 }
 0x1e7   :  { %v220_v32 = vmax.f32 %v219_v31, 0.0 }
 0x1e9   :  { %v222_v33 = vadd.f32 1e-05, %v220_v32 }
 0x1eb   :  { %877 = vrsqrt.f32 %v222_v33 }
 0x1f5   :  { %v878_v35 = vpop.eup %877 }
 0x1f6   :  { %v224_v37 = vmul.f32 %v878_v35, %v221_v34 }
 0x1f8   :  { %v230_v39 = vmul.f32 %v684_v36, %v224_v37 }
 0x1fa   :  { %v236_v40 = vadd.f32 %v685_v38, %v230_v39  ;;  %v706_v39 = vld [vmem:[%s1251_s6 + $0x1] ss:$0 sm:$0xff] }
 0x1fc   :  { %vm237_vm1 = vcmp.ge.f32.partialorder %v236_v40, 0.0  ;;  %v238_v41 = vmul.f32 0.2, %v236_v40 }
 0x1fe   :  { %v239_v42 = vsel %vm237_vm1, %v236_v40, %v238_v41 }
 0x1ff   :  { %v240_v43 = vpack.c.bf16 %v239_v42, %v239_v42 }
 0x201   :  { %792 = vmatmul.mubr.bf16.vlgmr.msra.gmra.mrb[0].mxu1 %v240_v43 }
 0x202   :  { %831 = vmatprep.mubr.msk.bf16.mxu1 %vm1033_vm0, %v1032_v0  ;;  %816 = vmatpush3.bf16.msra.mxu1 %v869_v21 }
 0x203   :  { %817 = vmatprep.subr.bf16.mxu1 %v1032_v0 }
 0x206   :  { %818 = vmatpush3.bf16.msra.mxu1 %v870_v22 }
 0x207   :  { %819 = vmatprep.subr.bf16.mxu1 %v1032_v0 }
 0x20a   :  { %820 = vmatpush3.bf16.msra.mxu1 %v871_v23 }
 0x20b   :  { %821 = vmatprep.subr.bf16.mxu1 %v1032_v0 }
 0x20e   :  { %822 = vmatpush3.bf16.msra.mxu1 %v872_v24 }
 0x20f   :  { %823 = vmatprep.subr.bf16.mxu1 %v1032_v0 }
 0x212   :  { %824 = vmatpush3.bf16.msra.mxu1 %v873_v25 }
 0x213   :  { %825 = vmatprep.subr.bf16.mxu1 %v1032_v0 }
 0x216   :  { %826 = vmatpush3.bf16.msra.mxu1 %v874_v26 }
 0x217   :  { %827 = vmatprep.subr.bf16.mxu1 %v1032_v0 }
 0x21a   :  { %828 = vmatpush3.bf16.msra.mxu1 %v875_v27 }
 0x21b   :  { %829 = vmatprep.subr.bf16.mxu1 %v1032_v0  ;;  %v707_v0 = vld [vmem:[%s1251_s6 + $0x2] ss:$0 sm:$0xff] }
 0x21e   :  { %830 = vmatpush3.bf16.msra.mxu1 %v876_v28 }
 0x2d4   :  { %v344_v45 = vpop.f32.mrb[0].mxu1 }
 0x2d5   :  { %v345_v46 = vadd.f32 %v686_v44, %v344_v45  ;;  %v793_v47 = vpop.f32.mrb[1].mxu1 }
 0x2d6   :  { %v347_v48 = vpop.f32.mrb[2].mxu1 }
 0x2d7   :  { %350 = vadd.xlane.f32.xlu1 %v345_v46  ;;  %v794_v49 = vpop.f32.mrb[3].mxu1  ;;  %v352_v50 = vmul.f32 %v345_v46, %v345_v46 }
 0x2db   :  { %353 = vadd.xlane.f32.xlu1 %v352_v50 }
 0x364   :  { %v351_v59 = vpop.xlane.xlu1 %350 }
 0x365   :  { %v355_v60 = vmul.f32 0.03125, %v351_v59 }
 0x367   :  { %v357_v62 = vmul.f32 %v355_v60, %v355_v60  ;;  %v360_v4 = vsub.f32 %v345_v46, %v355_v60  ;;  %v708_v46 = vld [vmem:[%s1253_s8] ss:$0 sm:$0xff] }
 0x368   :  { %v354_v61 = vpop.xlane.xlu1 %353 }
 0x369   :  { %v356_v63 = vmul.f32 0.03125, %v354_v61 }
 0x36b   :  { %v358_v1 = vsub.f32 %v356_v63, %v357_v62  ;;  %v717_v63 = vld [vmem:[%s1253_s8 + $0x1] ss:$0 sm:$0xff] }
 0x36d   :  { %v359_v2 = vmax.f32 %v358_v1, 0.0 }
 0x36f   :  { %v361_v3 = vadd.f32 1e-05, %v359_v2  ;;  %v718_v2 = vld [vmem:[%s1253_s8 + $0x2] ss:$0 sm:$0xff] }
 0x371   :  { %879 = vrsqrt.f32 %v361_v3 }
 0x37b   :  { %v880_v5 = vpop.eup %879 }
 0x37c   :  { %v363_v7 = vmul.f32 %v880_v5, %v360_v4 }
 0x37e   :  { %v369_v9 = vmul.f32 %v695_v6, %v363_v7 }
 0x380   :  { %v375_v10 = vadd.f32 %v696_v8, %v369_v9 }
 0x382   :  { %vm376_vm2 = vcmp.ge.f32.partialorder %v375_v10, 0.0  ;;  %v377_v11 = vmul.f32 0.2, %v375_v10 }
 0x384   :  { %v378_v12 = vsel %vm376_vm2, %v375_v10, %v377_v11 }
 0x385   :  { %v379_v13 = vpack.c.bf16 %v378_v12, %v378_v12 }
 0x387   :  { %812 = vmatmul.mubr.bf16.vlgmr.msra.gmra.mrb[4].mxu0 %v379_v13 }
 0x45a   :  { %v483_v15 = vpop.f32.mrb[4].mxu0 }
 0x45b   :  { %v484_v16 = vadd.f32 %v697_v14, %v483_v15  ;;  %v813_v17 = vpop.f32.mrb[5].mxu0 }
 0x45c   :  { %v486_v18 = vpop.f32.mrb[6].mxu0 }
 0x45d   :  { %489 = vadd.xlane.f32.xlu0 %v484_v16  ;;  %v814_v19 = vpop.f32.mrb[7].mxu0  ;;  %v491_v20 = vmul.f32 %v484_v16, %v484_v16 }
 0x45f   :  { %492 = vadd.xlane.f32.xlu1 %v491_v20 }
 0x4ea   :  { %v490_v29 = vpop.xlane.xlu0 %489 }
 0x4eb   :  { %v494_v30 = vmul.f32 0.03125, %v490_v29 }
 0x4ec   :  { %v493_v31 = vpop.xlane.xlu1 %492 }
 0x4ed   :  { %v496_v32 = vmul.f32 %v494_v30, %v494_v30  ;;  %v495_v33 = vmul.f32 0.03125, %v493_v31  ;;  %v499_v37 = vsub.f32 %v484_v16, %v494_v30 }
 0x4ef   :  { %v497_v34 = vsub.f32 %v495_v33, %v496_v32 }
 0x4f1   :  { %v498_v35 = vmax.f32 %v497_v34, 0.0 }
 0x4f3   :  { %v500_v36 = vadd.f32 1e-05, %v498_v35 }
 0x4f5   :  { %881 = vrsqrt.f32 %v500_v36 }
 0x4ff   :  { %v882_v38 = vpop.eup %881 }
 0x500   :  { %v502_v40 = vmul.f32 %v882_v38, %v499_v37 }
 0x502   :  { %v508_v41 = vmul.f32 %v706_v39, %v502_v40 }
 0x504   :  { %v514_v42 = vadd.f32 %v707_v0, %v508_v41 }
 0x506   :  { %vm515_vm3 = vcmp.ge.f32.partialorder %v514_v42, 0.0  ;;  %v516_v43 = vmul.f32 0.2, %v514_v42 }
 0x508   :  { %v517_v44 = vsel %vm515_vm3, %v514_v42, %v516_v43 }
 0x509   :  { %v518_v45 = vpack.c.bf16 %v517_v44, %v517_v44 }
 0x50b   :  { %832 = vmatmul.mubr.bf16.vlgmr.msra.gmra.mrb[4].mxu1 %v518_v45 }
 0x5de   :  { %v622_v47 = vpop.f32.mrb[4].mxu1 }
 0x5df   :  { %v623_v48 = vadd.f32 %v708_v46, %v622_v47  ;;  %v833_v49 = vpop.f32.mrb[5].mxu1 }
 0x5e0   :  { %v625_v50 = vpop.f32.mrb[6].mxu1 }
 0x5e1   :  { %628 = vadd.xlane.f32.xlu0 %v623_v48  ;;  %v834_v51 = vpop.f32.mrb[7].mxu1  ;;  %v630_v52 = vmul.f32 %v623_v48, %v623_v48 }
 0x5e3   :  { %631 = vadd.xlane.f32.xlu1 %v630_v52 }
 0x66e   :  { %v629_v53 = vpop.xlane.xlu0 %628 }
 0x66f   :  { %v633_v54 = vmul.f32 0.125, %v629_v53 }
 0x670   :  { %v632_v55 = vpop.xlane.xlu1 %631 }
 0x671   :  { %v635_v56 = vmul.f32 %v633_v54, %v633_v54  ;;  %v634_v57 = vmul.f32 0.125, %v632_v55  ;;  %v638_v61 = vsub.f32 %v623_v48, %v633_v54 }
 0x673   :  { %v636_v58 = vsub.f32 %v634_v57, %v635_v56 }
 0x675   :  { %v637_v59 = vmax.f32 %v636_v58, 0.0 }
 0x677   :  { %v639_v60 = vadd.f32 1e-05, %v637_v59 }
 0x679   :  { %883 = vrsqrt.f32 %v639_v60 }
 0x683   :  { %v884_v62 = vpop.eup %883 }
 0x684   :  { %v641_v1 = vmul.f32 %v884_v62, %v638_v61 }
 0x686   :  { %v647_v3 = vmul.f32 %v717_v63, %v641_v1 }
 0x688   :  { %v653_v4 = vadd.f32 %v718_v2, %v647_v3 }
 0x68a   :  { %vm654_vm4 = vcmp.ge.f32.partialorder %v653_v4, 0.0  ;;  %v655_v5 = vmul.f32 0.2, %v653_v4 }
 0x68c   :  { %v656_v6 = vsel %vm654_vm4, %v653_v4, %v655_v5 }
 0x68d   :  { %657 = vst [vmem:[#allocation11] sm:$0xff] %v656_v6 }
 0x68e   :  { %1006 = shalt.err (!%p1003_p2)
}
 0x68f   :  { %s1007_s8 = scalar_lea.hbm %s1254_s9, 128 }
 0x690   :  { %p1008_p3 = scmp.ne.s32.totalorder %s1254_s9, %s1007_s8  ;;  %p1011_p4 = scmp.lt.u32.totalorder %s1007_s8, %s1254_s9 }
 0x692   :  { %p1013_p5 = pnand %p1011_p4, %p1008_p3 }
 0x694   :  { %1016 = shalt.err (!%p1013_p5)
}
 0x695   :  { %667 = dma.vmem_to_hbm [thread:$0]  %s665_s5, 128, %s1254_s9, [#allocation4]  }
 0x696   :  { %1023 = dma.done.wait [#allocation4], 128  }
 0x697   :  { %1024 = vsyncadd [#allocation4], 4294967168 }
 0x698   :  { %671 = vsyncpa [#allocation3], 1 }
 0x699   :  { %672 = vsyncpa [#allocation6], 1 }
 0x69a   :  { %673 = vsyncpa [#allocation9], 1 }
 0x69b   :  { %674 = vsyncpa [#allocation4], 1 }

</bundles_post_ra>
